<compile_context>
chip_gen: v6e
topology: v6e:2x2x1
jax: 0.10.0
libtpu: 0.0.40
codegen_flags: <defaults>
</compile_context>

<pallas_src>
import functools

import jax
import jax.numpy as jnp
from jax import lax
from jax.experimental import pallas as pl
from jax.experimental.pallas import tpu as pltpu


# ----------------------------- helpers --------------------------------------


def _round_up(x: int, m: int) -> int:
    return (x + m - 1) // m * m


def _pad2d(a, rows: int, cols: int):
    r, c = a.shape
    return jnp.pad(a, ((0, rows - r), (0, cols - c)))


def _gelu_tanh(x):
    # TODO(synk): PyTorch nn.GELU() defaults to the exact erf form; the tanh
    # approximation (max deviation ~1e-3) is used since erf lowering on Mosaic
    # is not guaranteed.  The in-script reference uses the same formula.
    c = 0.7978845608028654  # sqrt(2/pi)
    return 0.5 * x * (1.0 + jnp.tanh(c * (x + 0.044715 * x * x * x)))


def _masked_layernorm(x, valid_dim: int, eps: float):
    """LayerNorm (elementwise_affine=False) over the first `valid_dim` lanes."""
    dp = x.shape[-1]
    if valid_dim == dp:
        mean = jnp.mean(x, axis=-1, keepdims=True)
        d = x - mean
    else:
        mask = (lax.broadcasted_iota(jnp.int32, x.shape, 1) < valid_dim).astype(x.dtype)
        mean = jnp.sum(x * mask, axis=-1, keepdims=True) * (1.0 / valid_dim)
        d = (x - mean) * mask
    var = jnp.sum(d * d, axis=-1, keepdims=True) * (1.0 / valid_dim)
    return d * lax.rsqrt(var + eps)


def _row_tile(rows: int, block_rows: int):
    tm = block_rows if rows >= block_rows else _round_up(max(rows, 16), 16)
    return tm, _round_up(rows, tm)


def _vmem_limit_bytes(footprint: int) -> int:
    # Clamp below the physical VMEM of the current generation (v7x: 64 MiB).
    try:
        cap = int(getattr(pltpu.get_tpu_info(), "vmem_capacity_bytes", 64 << 20))
    except Exception:  # pragma: no cover - CPU / interpret fallback
        cap = 64 << 20
    return int(min(cap * 3 // 4, max(16 << 20, 2 * footprint)))


# ----------------------------- kernels --------------------------------------


def _message_kernel(hi_ref, hj_ref, ea_ref, w_hi_ref, w_hj_ref, w_ea_ref, b_ref,
                    o_ref, *, valid_dim, valid_rows, eps):
    # Three split dots replace the concatenated-input matmul; f32 accumulation.
    z = jnp.dot(hi_ref[...], w_hi_ref[...], preferred_element_type=jnp.float32)
    z = z + jnp.dot(hj_ref[...], w_hj_ref[...], preferred_element_type=jnp.float32)
    z = z + jnp.dot(ea_ref[...], w_ea_ref[...], preferred_element_type=jnp.float32)
    z = z + b_ref[...]
    out = _masked_layernorm(_gelu_tanh(z), valid_dim, eps)
    if valid_rows is not None:
        # Zero padded edge rows so they contribute nothing to the scatter-mean.
        rid = lax.broadcasted_iota(jnp.int32, out.shape, 0) + pl.program_id(0) * out.shape[0]
        out = jnp.where(rid < valid_rows, out, 0.0)
    o_ref[...] = out.astype(o_ref.dtype)


def _update_kernel(h_ref, agg_ref, w_h_ref, w_a_ref, b_ref, o_ref, *, valid_dim, eps):
    h = h_ref[...]                                   # f32, used for residual too
    z = jnp.dot(h.astype(w_h_ref.dtype), w_h_ref[...],
                preferred_element_type=jnp.float32)
    z = z + jnp.dot(agg_ref[...], w_a_ref[...], preferred_element_type=jnp.float32)
    z = z + b_ref[...]
    upd = _masked_layernorm(z, valid_dim, eps)       # (TM, Dp)
    o_ref[...] = (h + upd[:, : h.shape[-1]]).astype(o_ref.dtype)


# --------------------------- pallas_call wrappers ----------------------------


def _message_call(hi, hj, ea, w_hi, w_hj, w_ea, b, *, dim, n_edges, tm, eps, out_dtype):
    e_p, dk = hi.shape
    da_p = ea.shape[1]
    dp = w_hi.shape[1]
    isz = jnp.dtype(hi.dtype).itemsize
    osz = jnp.dtype(out_dtype).itemsize
    footprint = (2 * (2 * tm * dk * isz + tm * da_p * 4 + tm * dp * osz)
                 + 2 * dk * dp * isz + da_p * dp * 4 + dp * 4)
    kern = functools.partial(_message_kernel, valid_dim=dim,
                             valid_rows=(n_edges if e_p > n_edges else None), eps=eps)
    return pl.pallas_call(
        kern,
        out_shape=jax.ShapeDtypeStruct((e_p, dp), out_dtype),
        grid_spec=pltpu.PrefetchScalarGridSpec(
            num_scalar_prefetch=0,
            grid=(e_p // tm,),
            in_specs=[
                pl.BlockSpec((tm, dk), lambda i: (i, 0)),     # h_i   (streamed)
                pl.BlockSpec((tm, dk), lambda i: (i, 0)),     # h_j   (streamed)
                pl.BlockSpec((tm, da_p), lambda i: (i, 0)),   # p_i-p_j (streamed, f32)
                pl.BlockSpec((dk, dp), lambda i: (0, 0)),     # W1[:dim]     (resident)
                pl.BlockSpec((dk, dp), lambda i: (0, 0)),     # W1[dim:2dim] (resident)
                pl.BlockSpec((da_p, dp), lambda i: (0, 0)),   # W1[2dim:]    (resident)
                pl.BlockSpec((1, dp), lambda i: (0, 0)),      # bias         (resident)
            ],
            out_specs=pl.BlockSpec((tm, dp), lambda i: (i, 0)),
        ),
        compiler_params=pltpu.CompilerParams(
            dimension_semantics=("parallel",),
            vmem_limit_bytes=_vmem_limit_bytes(footprint)),
    )(hi, hj, ea, w_hi, w_hj, w_ea, b)


def _update_call(h, agg, w_h, w_a, b, *, dim, tm, eps):
    n_p, dk = h.shape
    dp = w_h.shape[1]
    isz = jnp.dtype(agg.dtype).itemsize
    footprint = (2 * (tm * dk * 4 + tm * dk * isz + tm * dk * 4)
                 + 2 * dk * dp * isz + dp * 4)
    kern = functools.partial(_update_kernel, valid_dim=dim, eps=eps)
    return pl.pallas_call(
        kern,
        out_shape=jax.ShapeDtypeStruct((n_p, dk), jnp.float32),
        grid_spec=pltpu.PrefetchScalarGridSpec(
            num_scalar_prefetch=0,
            grid=(n_p // tm,),
            in_specs=[
                pl.BlockSpec((tm, dk), lambda i: (i, 0)),     # h (f32: matmul + residual)
                pl.BlockSpec((tm, dk), lambda i: (i, 0)),     # aggregated messages
                pl.BlockSpec((dk, dp), lambda i: (0, 0)),     # W2[:dim]  (resident)
                pl.BlockSpec((dk, dp), lambda i: (0, 0)),     # W2[dim:]  (resident)
                pl.BlockSpec((1, dp), lambda i: (0, 0)),      # bias      (resident)
            ],
            out_specs=pl.BlockSpec((tm, dk), lambda i: (i, 0)),
        ),
        compiler_params=pltpu.CompilerParams(
            dimension_semantics=("parallel",),
            vmem_limit_bytes=_vmem_limit_bytes(footprint)),
    )(h, agg, w_h, w_a, b)


# ----------------------------- MPNN forward ----------------------------------


def mpnn_forward(x, pos, edge_index, params, *, eps=1e-5, block_rows=1024,
                 compute_dtype=None):
    """Functional MPNN forward matching the PyTorch module.

    params: list (one per message-passing step) of tuples
            (w_msg, b_msg, w_upd, b_upd), weights stored as (in_features, out_features).
    compute_dtype: None (f32) or jnp.bfloat16.  bf16 halves the streamed matmul
        operand / message-writeback bytes and is recommended on ALL generations
        (v5e benefits most, lowest HBM bandwidth); accumulation, LayerNorm and
        the residual path stay f32.
    block_rows: row-tile size (multiple of 16); default 1024, sweep 1024-2048
        (per-tile footprint is only a few MB, fits every generation incl. v7x).
    """
    n, dim = x.shape
    da = pos.shape[1]
    row = edge_index[0].astype(jnp.int32)
    col = edge_index[1].astype(jnp.int32)
    e = row.shape[0]

    in_dt = jnp.float32 if compute_dtype is None else jnp.dtype(compute_dtype)
    msg_dt = in_dt                      # message writeback in the compute dtype
    dk = _round_up(dim, 8)              # lane-padded node-feature width
    dp = _round_up(dim, 128)            # lane-dense MLP output width
    da_p = _round_up(da, 8)

    tm_e, e_p = _row_tile(e, block_rows)
    tm_n, n_p = _row_tile(n, block_rows)

    # Node features kept row/lane padded in f32 across all mp steps (no
    # per-step slice/concat/re-pad glue).
    h = _pad2d(x.astype(jnp.float32), n_p, dk)

    row_p = jnp.pad(row, (0, e_p - e))          # padded edges gather row 0 ...
    col_p = jnp.pad(col, (0, e_p - e))          # ... and scatter zeros to node 0

    # compute_edge_attr (the torch.no_grad glue): pos_i - pos_j per edge.
    ea = (jnp.take(pos, row, axis=0) - jnp.take(pos, col, axis=0)).astype(jnp.float32)
    ea = _pad2d(ea, e_p, da_p)

    cnt = jax.ops.segment_sum(jnp.ones((e,), jnp.float32), col, num_segments=n_p)
    inv_cnt = 1.0 / jnp.maximum(cnt, 1.0)       # scatter_mean denominator (empty -> 0)

    for (w_msg, b_msg, w_upd, b_upd) in params:
        # --- resident weight slices (tiny, per-step) ---
        w_msg = w_msg.astype(jnp.float32)
        w_hi = _pad2d(w_msg[:dim], dk, dp).astype(in_dt)
        w_hj = _pad2d(w_msg[dim:2 * dim], dk, dp).astype(in_dt)
        w_ea = _pad2d(w_msg[2 * dim:], da_p, dp)            # kept f32 (tiny stream)
        b_m = _pad2d(b_msg.reshape(1, -1).astype(jnp.float32), 1, dp)

        # --- per-edge gathers (XLA glue) ---
        # TODO(synk): fuse via scalar-prefetch driven DMA gather inside the kernel.
        hi = jnp.take(h, row_p, axis=0).astype(in_dt)
        hj = jnp.take(h, col_p, axis=0).astype(in_dt)

        # --- messages: m_ij = LN(GELU(W1 [h_i, h_j, p_i - p_j] + b1)) ---
        msg = _message_call(hi, hj, ea, w_hi, w_hj, w_ea, b_m,
                            dim=dim, n_edges=e, tm=tm_e, eps=eps, out_dtype=msg_dt)

        # --- aggregation: scatter_mean over the receivers (col) ---
        # Padded edge rows were zeroed in-kernel, so no slice is needed here.
        agg = (jax.ops.segment_sum(msg, col_p, num_segments=n_p)[:, :dk]
               * inv_cnt[:, None]).astype(in_dt)

        # --- update: h <- h + LN(W2 [h, m_i] + b2) ---
        w_upd = w_upd.astype(jnp.float32)
        w_uh = _pad2d(w_upd[:dim], dk, dp).astype(in_dt)
        w_ua = _pad2d(w_upd[dim:], dk, dp).astype(in_dt)
        b_u = _pad2d(b_upd.reshape(1, -1).astype(jnp.float32), 1, dp)

        h = _update_call(h, agg, w_uh, w_ua, b_u, dim=dim, tm=tm_n, eps=eps)

    return h[:n, :dim]


# ----------------------------- reference -------------------------------------


def _reference(x, pos, edge_index, params, eps=1e-5):
    n, dim = x.shape
    row, col = edge_index[0], edge_index[1]
    e = row.shape[0]
    edge_attr = pos[row] - pos[col]

    def ln(v):
        m = v.mean(-1, keepdims=True)
        var = ((v - m) ** 2).mean(-1, keepdims=True)
        return (v - m) / jnp.sqrt(var + eps)

    h = x
    cnt = jax.ops.segment_sum(jnp.ones((e,), jnp.float32), col, num_segments=n)
    for (w_m, b_m, w_u, b_u) in params:
        mi = jnp.concatenate([h[row], h[col], edge_attr], axis=-1)
        msg = ln(_gelu_tanh(mi @ w_m + b_m))
        agg = jax.ops.segment_sum(msg, col, num_segments=n) / jnp.maximum(cnt, 1.0)[:, None]
        upd = ln(jnp.concatenate([h, agg], axis=-1) @ w_u + b_u)
        h = h + upd
    return h


# ------------------------------- demo ----------------------------------------


if __name__ == "__main__":
    n_nodes = 60          # not a multiple of 16 -> exercises node-row padding
    dim = 32
    dimensionality = 3
    mp_steps = 2
    n_edges = 250         # not a multiple of 16 -> exercises edge-row masking

    key = jax.random.PRNGKey(0)
    k_x, k_pos, k_row, k_col, k_p = jax.random.split(key, 5)
    x = jax.random.normal(k_x, (n_nodes, dim), jnp.float32)
    pos = jax.random.normal(k_pos, (n_nodes, dimensionality), jnp.float32)
    row = jax.random.randint(k_row, (n_edges,), 0, n_nodes, jnp.int32)
    col = jax.random.randint(k_col, (n_edges,), 0, n_nodes, jnp.int32)
    edge_index = jnp.stack([row, col])

    # nn.Linear-style uniform init (weights stored as (in, out)); deterministic.
    params = []
    pkeys = jax.random.split(k_p, 4 * mp_steps)
    for s in range(mp_steps):
        fi_m = 2 * dim + dimensionality
        fi_u = 2 * dim
        bm = 1.0 / (fi_m ** 0.5)
        bu = 1.0 / (fi_u ** 0.5)
        params.append((
            jax.random.uniform(pkeys[4 * s + 0], (fi_m, dim), jnp.float32, -bm, bm),
            jax.random.uniform(pkeys[4 * s + 1], (dim,), jnp.float32, -bm, bm),
            jax.random.uniform(pkeys[4 * s + 2], (fi_u, dim), jnp.float32, -bu, bu),
            jax.random.uniform(pkeys[4 * s + 3], (dim,), jnp.float32, -bu, bu),
        ))

    # f32 run: tight check against the pure-JAX reference.
    out = mpnn_forward(x, pos, edge_index, params)
    out = jax.block_until_ready(out)
    ref = _reference(x, pos, edge_index, params)
    assert out.shape == (n_nodes, dim)
    assert jnp.allclose(out, ref, atol=2e-3, rtol=2e-3), \
        f"max abs err {jnp.max(jnp.abs(out - ref))}"

    # bf16-staged run (recommended on v5e/v6e/v7x): loose check.
    out_bf16 = mpnn_forward(x, pos, edge_index, params, compute_dtype=jnp.bfloat16)
    out_bf16 = jax.block_until_ready(out_bf16)
    assert out_bf16.shape == (n_nodes, dim)
    assert bool(jnp.all(jnp.isfinite(out_bf16)))
    assert float(jnp.max(jnp.abs(out_bf16 - ref))) < 0.5

    print("KERNEL_OK")
</pallas_src>

<mosaic_0001>
module attributes {stable_mosaic.version = 11 : i64} {
  func.func @_message_kernel(%arg0: i32, %arg1: memref<256x32xf32, #tpu.memory_space<vmem>>, %arg2: memref<256x32xf32, #tpu.memory_space<vmem>>, %arg3: memref<256x8xf32, #tpu.memory_space<vmem>>, %arg4: memref<32x128xf32, #tpu.memory_space<vmem>>, %arg5: memref<32x128xf32, #tpu.memory_space<vmem>>, %arg6: memref<8x128xf32, #tpu.memory_space<vmem>>, %arg7: memref<1x128xf32, #tpu.memory_space<vmem>>, %arg8: memref<256x128xf32, #tpu.memory_space<vmem>>) attributes {dimension_semantics = [#tpu.dimension_semantics<parallel>], iteration_bounds = array<i64: 1>, scalar_prefetch = 0 : i64, scratch_operands = 0 : i64, tpu.core_type = #tpu.core_type<tc>, window_params = [{transform_indices = @transform_0, window_bounds = array<i64: 256, 32>}, {transform_indices = @transform_1, window_bounds = array<i64: 256, 32>}, {transform_indices = @transform_2, window_bounds = array<i64: 256, 8>}, {pipeline_mode = #tpu.pipeline_mode<synchronous>, transform_indices = @transform_3, window_bounds = array<i64: 32, 128>}, {pipeline_mode = #tpu.pipeline_mode<synchronous>, transform_indices = @transform_4, window_bounds = array<i64: 32, 128>}, {pipeline_mode = #tpu.pipeline_mode<synchronous>, transform_indices = @transform_5, window_bounds = array<i64: 8, 128>}, {pipeline_mode = #tpu.pipeline_mode<synchronous>, transform_indices = @transform_6, window_bounds = array<i64: 1, 128>}, {transform_indices = @transform_7, window_bounds = array<i64: 256, 128>}]} {
    %c0 = arith.constant 0 : index
    %c0_0 = arith.constant 0 : index
    %0 = vector.load %arg1[%c0, %c0_0] : memref<256x32xf32, #tpu.memory_space<vmem>>, vector<256x32xf32>
    %c0_1 = arith.constant 0 : index
    %c0_2 = arith.constant 0 : index
    %1 = vector.load %arg4[%c0_1, %c0_2] : memref<32x128xf32, #tpu.memory_space<vmem>>, vector<32x128xf32>
    %cst = arith.constant dense<0.000000e+00> : vector<256x128xf32>
    %2 = tpu.matmul %0, %1, %cst {dimension_numbers = #tpu.dot_dimension_numbers<[1], [0], [0], [1], [0, 0, 1, 1], [], []>} : vector<256x32xf32>, vector<32x128xf32>, vector<256x128xf32> -> vector<256x128xf32>
    %c0_3 = arith.constant 0 : index
    %c0_4 = arith.constant 0 : index
    %3 = vector.load %arg2[%c0_3, %c0_4] : memref<256x32xf32, #tpu.memory_space<vmem>>, vector<256x32xf32>
    %c0_5 = arith.constant 0 : index
    %c0_6 = arith.constant 0 : index
    %4 = vector.load %arg5[%c0_5, %c0_6] : memref<32x128xf32, #tpu.memory_space<vmem>>, vector<32x128xf32>
    %cst_7 = arith.constant dense<0.000000e+00> : vector<256x128xf32>
    %5 = tpu.matmul %3, %4, %cst_7 {dimension_numbers = #tpu.dot_dimension_numbers<[1], [0], [0], [1], [0, 0, 1, 1], [], []>} : vector<256x32xf32>, vector<32x128xf32>, vector<256x128xf32> -> vector<256x128xf32>
    %6 = arith.addf %2, %5 : vector<256x128xf32>
    %c0_8 = arith.constant 0 : index
    %c0_9 = arith.constant 0 : index
    %7 = vector.load %arg3[%c0_8, %c0_9] : memref<256x8xf32, #tpu.memory_space<vmem>>, vector<256x8xf32>
    %c0_10 = arith.constant 0 : index
    %c0_11 = arith.constant 0 : index
    %8 = vector.load %arg6[%c0_10, %c0_11] : memref<8x128xf32, #tpu.memory_space<vmem>>, vector<8x128xf32>
    %cst_12 = arith.constant dense<0.000000e+00> : vector<256x128xf32>
    %9 = tpu.matmul %7, %8, %cst_12 {dimension_numbers = #tpu.dot_dimension_numbers<[1], [0], [0], [1], [0, 0, 1, 1], [], []>} : vector<256x8xf32>, vector<8x128xf32>, vector<256x128xf32> -> vector<256x128xf32>
    %10 = arith.addf %6, %9 : vector<256x128xf32>
    %c0_13 = arith.constant 0 : index
    %c0_14 = arith.constant 0 : index
    %11 = vector.load %arg7[%c0_13, %c0_14] : memref<1x128xf32, #tpu.memory_space<vmem>>, vector<1x128xf32>
    %12 = vector.broadcast %11 : vector<1x128xf32> to vector<256x128xf32>
    %13 = arith.addf %10, %12 : vector<256x128xf32>
    %cst_15 = arith.constant 5.000000e-01 : f32
    %14 = vector.broadcast %cst_15 : f32 to vector<256x128xf32>
    %15 = arith.mulf %14, %13 : vector<256x128xf32>
    %cst_16 = arith.constant 4.471500e-02 : f32
    %16 = vector.broadcast %cst_16 : f32 to vector<256x128xf32>
    %17 = arith.mulf %16, %13 : vector<256x128xf32>
    %18 = arith.mulf %17, %13 : vector<256x128xf32>
    %19 = arith.mulf %18, %13 : vector<256x128xf32>
    %20 = arith.addf %13, %19 : vector<256x128xf32>
    %cst_17 = arith.constant 0.797884583 : f32
    %21 = vector.broadcast %cst_17 : f32 to vector<256x128xf32>
    %22 = arith.mulf %21, %20 : vector<256x128xf32>
    %23 = math.tanh %22 : vector<256x128xf32>
    %cst_18 = arith.constant 1.000000e+00 : f32
    %24 = vector.broadcast %cst_18 : f32 to vector<256x128xf32>
    %25 = arith.addf %24, %23 : vector<256x128xf32>
    %26 = arith.mulf %15, %25 : vector<256x128xf32>
    %27 = tpu.iota {dimensions = array<i32: 1>} : vector<256x128xi32>
    %c32_i32 = arith.constant 32 : i32
    %28 = vector.broadcast %c32_i32 : i32 to vector<256x128xi32>
    %29 = arith.cmpi slt, %27, %28 : vector<256x128xi32>
    %30 = arith.extui %29 : vector<256x128xi1> to vector<256x128xi32>
    %31 = arith.sitofp %30 : vector<256x128xi32> to vector<256x128xf32>
    %32 = arith.mulf %26, %31 : vector<256x128xf32>
    %cst_19 = arith.constant dense<0.000000e+00> : vector<256xf32>
    %33 = vector.multi_reduction <add>, %32, %cst_19 [1] : vector<256x128xf32> to vector<256xf32>
    %34 = vector.shape_cast %33 : vector<256xf32> to vector<256x1xf32>
    %cst_20 = arith.constant 3.125000e-02 : f32
    %35 = vector.broadcast %cst_20 : f32 to vector<256x1xf32>
    %36 = arith.mulf %34, %35 : vector<256x1xf32>
    %37 = vector.broadcast %36 : vector<256x1xf32> to vector<256x128xf32>
    %38 = arith.subf %26, %37 : vector<256x128xf32>
    %39 = arith.mulf %38, %31 : vector<256x128xf32>
    %40 = arith.mulf %39, %39 : vector<256x128xf32>
    %cst_21 = arith.constant dense<0.000000e+00> : vector<256xf32>
    %41 = vector.multi_reduction <add>, %40, %cst_21 [1] : vector<256x128xf32> to vector<256xf32>
    %42 = vector.shape_cast %41 : vector<256xf32> to vector<256x1xf32>
    %cst_22 = arith.constant 3.125000e-02 : f32
    %43 = vector.broadcast %cst_22 : f32 to vector<256x1xf32>
    %44 = arith.mulf %42, %43 : vector<256x1xf32>
    %cst_23 = arith.constant 9.99999974E-6 : f32
    %45 = vector.broadcast %cst_23 : f32 to vector<256x1xf32>
    %46 = arith.addf %44, %45 : vector<256x1xf32>
    %47 = math.rsqrt %46 : vector<256x1xf32>
    %48 = vector.broadcast %47 : vector<256x1xf32> to vector<256x128xf32>
    %49 = arith.mulf %39, %48 : vector<256x128xf32>
    %50 = tpu.iota {dimensions = array<i32: 0>} : vector<256x128xi32>
    %c256_i32 = arith.constant 256 : i32
    %51 = arith.muli %arg0, %c256_i32 : i32
    %52 = vector.broadcast %51 : i32 to vector<256x128xi32>
    %53 = arith.addi %50, %52 : vector<256x128xi32>
    %c250_i32 = arith.constant 250 : i32
    %54 = vector.broadcast %c250_i32 : i32 to vector<256x128xi32>
    %55 = arith.cmpi slt, %53, %54 : vector<256x128xi32>
    %cst_24 = arith.constant 0.000000e+00 : f32
    %56 = vector.broadcast %cst_24 : f32 to vector<256x128xf32>
    %57 = arith.select %55, %49, %56 : vector<256x128xi1>, vector<256x128xf32>
    %c0_25 = arith.constant 0 : index
    %c0_26 = arith.constant 0 : index
    %58 = vector.load %arg8[%c0_25, %c0_26] : memref<256x128xf32, #tpu.memory_space<vmem>>, vector<256x128xf32>
    tpu.vector_store %arg8[%c0_25, %c0_26], %57 {strides = array<i32>} : memref<256x128xf32, #tpu.memory_space<vmem>>, vector<256x128xf32>,
    return
  }
  func.func @transform_0(%arg0: i32) -> (i32, i32) {
    %c0_i32 = arith.constant 0 : i32
    %c0_i32_0 = arith.constant 0 : i32
    return %arg0, %c0_i32 : i32, i32
  }
  func.func @transform_1(%arg0: i32) -> (i32, i32) {
    %c0_i32 = arith.constant 0 : i32
    %c0_i32_0 = arith.constant 0 : i32
    return %arg0, %c0_i32 : i32, i32
  }
  func.func @transform_2(%arg0: i32) -> (i32, i32) {
    %c0_i32 = arith.constant 0 : i32
    %c0_i32_0 = arith.constant 0 : i32
    return %arg0, %c0_i32 : i32, i32
  }
  func.func @transform_3(%arg0: i32) -> (i32, i32) {
    %c0_i32 = arith.constant 0 : i32
    %c0_i32_0 = arith.constant 0 : i32
    %c0_i32_1 = arith.constant 0 : i32
    return %c0_i32, %c0_i32_0 : i32, i32
  }
  func.func @transform_4(%arg0: i32) -> (i32, i32) {
    %c0_i32 = arith.constant 0 : i32
    %c0_i32_0 = arith.constant 0 : i32
    %c0_i32_1 = arith.constant 0 : i32
    return %c0_i32, %c0_i32_0 : i32, i32
  }
  func.func @transform_5(%arg0: i32) -> (i32, i32) {
    %c0_i32 = arith.constant 0 : i32
    %c0_i32_0 = arith.constant 0 : i32
    %c0_i32_1 = arith.constant 0 : i32
    return %c0_i32, %c0_i32_0 : i32, i32
  }
  func.func @transform_6(%arg0: i32) -> (i32, i32) {
    %c0_i32 = arith.constant 0 : i32
    %c0_i32_0 = arith.constant 0 : i32
    %c0_i32_1 = arith.constant 0 : i32
    return %c0_i32, %c0_i32_0 : i32, i32
  }
  func.func @transform_7(%arg0: i32) -> (i32, i32) {
    %c0_i32 = arith.constant 0 : i32
    %c0_i32_0 = arith.constant 0 : i32
    return %arg0, %c0_i32 : i32, i32
  }
}

</mosaic_0001>

<bundles_post_ra>
// kernel: tpu_custom_call.1
= control target key start
LH: loop header
LB: loop body
LE: loop exit
PB: predicated region body
PF: predicated region fallthrough
CT: control target
= control target key end

     0   :  { %vm99_vm0 = vcmask 261120   ;;  %s3813_s0 = inlined_call_operand.vmem [shape: f32[256,32], index: 0, kind: input, shape index: {}]   ;;  %s3814_s1 = inlined_call_operand.vmem [shape: f32[256,32], index: 1, kind: input, shape index: {}]   ;;  %s3815_s2 = inlined_call_operand.vmem [shape: f32[256,8], index: 2, kind: input, shape index: {}]   ;;  %s3816_s3 = inlined_call_operand.vmem [shape: f32[32,128], index: 3, kind: input, shape index: {}]   ;;  %s3817_s4 = inlined_call_operand.vmem [shape: f32[32,128], index: 4, kind: input, shape index: {}]   ;;  %s3818_s5 = inlined_call_operand.vmem [shape: f32[8,128], index: 5, kind: input, shape index: {}]   ;;  %s3819_s6 = inlined_call_operand.vmem [shape: f32[1,128], index: 6, kind: input, shape index: {}]   ;;  %s3820_s7 = inlined_call_operand.hbm [shape: f32[256,128], index: 7, kind: output, shape index: {}]  }
   0x1   :  { %v98_v0 = vld [vmem:[%s3817_s4 + $0x18] sm:$0xff]  ;;  %v97_v1 = vld [vmem:[%s3817_s4 + $0x10] sm:$0xff]  ;;  %v96_v2 = vld [vmem:[%s3817_s4 + $0x8] sm:$0xff] }
   0x2   :  { %2421 = vmatprep.subr.mxu1 %v98_v0  ;;  %2259 = vmatprep.subr.mxu0 %v98_v0  ;;  %v95_v3 = vld [vmem:[%s3817_s4] sm:$0xff]  ;;  %v80_v6 = vld [vmem:[%s3814_s1 + $0x88] sm:$0xff]  ;;  %v62_v7 = vld [vmem:[%s3816_s3 + $0x18] sm:$0xff] }
   0x3   :  { %2425 = vmatpush3.msra.mxu1 %v98_v0  ;;  %2260 = vmatpush3.msra.mxu0 %v98_v0  ;;  %v79_v4 = vld [vmem:[%s3814_s1 + $0x80] sm:$0xff]  ;;  %v64_v8 = vld [vmem:[%s3814_s1 + $0x8] sm:$0xff]  ;;  %v81_v10 = vld [vmem:[%s3814_s1 + $0x90] sm:$0xff] }
   0x4   :  { %2422 = vmatprep.subr.mxu1 %v97_v1  ;;  %2261 = vmatprep.subr.mxu0 %v97_v1  ;;  %v63_v5 = vld [vmem:[%s3814_s1] sm:$0xff]  ;;  %v65_v11 = vld [vmem:[%s3814_s1 + $0x10] sm:$0xff]  ;;  %v82_v12 = vld [vmem:[%s3814_s1 + $0x98] sm:$0xff] }
   0x5   :  { %2426 = vmatpush3.msra.mxu1 %v97_v1  ;;  %2262 = vmatpush3.msra.mxu0 %v97_v1  ;;  %v774_v9 = vld [vmem:[%s3818_s5] sm:$0xff]  ;;  %v61_v13 = vld [vmem:[%s3816_s3 + $0x10] sm:$0xff]  ;;  %v66_v14 = vld [vmem:[%s3814_s1 + $0x18] sm:$0xff] }
   0x6   :  { %2423 = vmatprep.subr.mxu1 %v96_v2  ;;  %2263 = vmatprep.subr.mxu0 %v96_v2  ;;  %v83_v15 = vld [vmem:[%s3814_s1 + $0xa0] sm:$0xff]  ;;  %v60_v17 = vld [vmem:[%s3816_s3 + $0x8] sm:$0xff]  ;;  %v85_v20 = vld [vmem:[%s3814_s1 + $0xb0] sm:$0xff] }
   0x7   :  { %2427 = vmatpush3.msra.mxu1 %v96_v2  ;;  %2264 = vmatpush3.msra.mxu0 %v96_v2  ;;  %v67_v16 = vld [vmem:[%s3814_s1 + $0x20] sm:$0xff]  ;;  %v84_v18 = vld [vmem:[%s3814_s1 + $0xa8] sm:$0xff]  ;;  %v69_v21 = vld [vmem:[%s3814_s1 + $0x30] sm:$0xff] }
   0x8   :  { %2424 = vmatprep.subr.mxu1 %v95_v3  ;;  %2265 = vmatprep.subr.mxu0 %v95_v3  ;;  %v68_v19 = vld [vmem:[%s3814_s1 + $0x28] sm:$0xff]  ;;  %v59_v22 = vld [vmem:[%s3816_s3] sm:$0xff]  ;;  %v86_v23 = vld [vmem:[%s3814_s1 + $0xb8] sm:$0xff] }
   0x9   :  { %2428 = vmatpush3.msra.mxu1 %v95_v3  ;;  %2291 = vmatprep.mubr.msk.f32.mxu1 %vm99_vm0, %v79_v4  ;;  %v70_v24 = vld [vmem:[%s3814_s1 + $0x38] sm:$0xff]  ;;  %v87_v25 = vld [vmem:[%s3814_s1 + $0xc0] sm:$0xff]  ;;  %v88_v27 = vld [vmem:[%s3814_s1 + $0xc8] sm:$0xff] }
   0xa   :  { %2266 = vmatpush3.msra.mxu0 %v95_v3  ;;  %2267 = vmatprep.mubr.msk.f32.mxu0 %vm99_vm0, %v63_v5  ;;  %v71_v26 = vld [vmem:[%s3814_s1 + $0x40] sm:$0xff]  ;;  %v72_v28 = vld [vmem:[%s3814_s1 + $0x48] sm:$0xff]  ;;  %v89_v29 = vld [vmem:[%s3814_s1 + $0xd0] sm:$0xff] }
   0xb   :  { %2292 = vmatmul.mubr.msk.f32.vlgmr.msra.gmra.mxu1 %vm99_vm0, %v80_v6  ;;  %2315 = vmatprep.subr.mxu1 %v62_v7  ;;  %v73_v30 = vld [vmem:[%s3814_s1 + $0x50] sm:$0xff]  ;;  %v90_v31 = vld [vmem:[%s3814_s1 + $0xd8] sm:$0xff]  ;;  %v91_v33 = vld [vmem:[%s3814_s1 + $0xe0] sm:$0xff] }
   0xc   :  { %2268 = vmatmul.mubr.msk.f32.vlgmr.msra.gmra.mxu0 %vm99_vm0, %v64_v8  ;;  %2316 = vmatpush3.msra.mxu1 %v62_v7  ;;  %v74_v32 = vld [vmem:[%s3814_s1 + $0x58] sm:$0xff]  ;;  %v75_v34 = vld [vmem:[%s3814_s1 + $0x60] sm:$0xff]  ;;  %v92_v35 = vld [vmem:[%s3814_s1 + $0xe8] sm:$0xff] }
   0xd   :  { %2371 = vmatprep.subr.mxu0 %v774_v9  ;;  %2294 = vmatprep.mubr.msk.f32.mxu1 %vm99_vm0, %v81_v10  ;;  %v76_v36 = vld [vmem:[%s3814_s1 + $0x68] sm:$0xff]  ;;  %v93_v37 = vld [vmem:[%s3814_s1 + $0xf0] sm:$0xff]  ;;  %v94_v39 = vld [vmem:[%s3814_s1 + $0xf8] sm:$0xff] }
   0xe   :  { %2372 = vmatpush3.msra.mxu0 %v774_v9  ;;  %2270 = vmatprep.mubr.msk.f32.mxu0 %vm99_vm0, %v65_v11  ;;  %v77_v38 = vld [vmem:[%s3814_s1 + $0x70] sm:$0xff] }
   0xf   :  { %2295 = vmatmul.mubr.msk.f32.gmra.mxu1 %vm99_vm0, %v82_v12  ;;  %2317 = vmatprep.subr.mxu1 %v61_v13 }
  0x10   :  { %2271 = vmatmul.mubr.msk.f32.gmra.mxu0 %vm99_vm0, %v66_v14  ;;  %2297 = vmatprep.mubr.msk.f32.mxu1 %vm99_vm0, %v83_v15 }
  0x11   :  { %2273 = vmatprep.mubr.msk.f32.mxu0 %vm99_vm0, %v67_v16  ;;  %2318 = vmatpush3.msra.mxu1 %v61_v13 }
  0x12   :  { %2319 = vmatprep.subr.mxu1 %v60_v17 }
  0x13   :  { %2298 = vmatmul.mubr.msk.f32.gmra.mxu1 %vm99_vm0, %v84_v18 }
  0x14   :  { %2274 = vmatmul.mubr.msk.f32.gmra.mxu0 %vm99_vm0, %v68_v19  ;;  %2300 = vmatprep.mubr.msk.f32.mxu1 %vm99_vm0, %v85_v20 }
  0x15   :  { %2276 = vmatprep.mubr.msk.f32.mxu0 %vm99_vm0, %v69_v21  ;;  %2320 = vmatpush3.msra.mxu1 %v60_v17 }
  0x16   :  { %2321 = vmatprep.subr.mxu1 %v59_v22 }
  0x17   :  { %2301 = vmatmul.mubr.msk.f32.gmra.mxu1 %vm99_vm0, %v86_v23 }
  0x18   :  { %2277 = vmatmul.mubr.msk.f32.gmra.mxu0 %vm99_vm0, %v70_v24  ;;  %2303 = vmatprep.mubr.msk.f32.mxu1 %vm99_vm0, %v87_v25 }
  0x19   :  { %2279 = vmatprep.mubr.msk.f32.mxu0 %vm99_vm0, %v71_v26  ;;  %2322 = vmatpush3.msra.mxu1 %v59_v22 }
  0x1b   :  { %2304 = vmatmul.mubr.msk.f32.gmra.mxu1 %vm99_vm0, %v88_v27 }
  0x1c   :  { %2280 = vmatmul.mubr.msk.f32.gmra.mxu0 %vm99_vm0, %v72_v28  ;;  %2306 = vmatprep.mubr.msk.f32.mxu1 %vm99_vm0, %v89_v29 }
  0x1d   :  { %2282 = vmatprep.mubr.msk.f32.mxu0 %vm99_vm0, %v73_v30 }
  0x1f   :  { %2307 = vmatmul.mubr.msk.f32.gmra.mxu1 %vm99_vm0, %v90_v31 }
  0x20   :  { %2283 = vmatmul.mubr.msk.f32.gmra.mxu0 %vm99_vm0, %v74_v32  ;;  %2309 = vmatprep.mubr.msk.f32.mxu1 %vm99_vm0, %v91_v33 }
  0x21   :  { %2285 = vmatprep.mubr.msk.f32.mxu0 %vm99_vm0, %v75_v34 }
  0x23   :  { %2310 = vmatmul.mubr.msk.f32.gmra.mxu1 %vm99_vm0, %v92_v35 }
  0x24   :  { %2286 = vmatmul.mubr.msk.f32.gmra.mxu0 %vm99_vm0, %v76_v36  ;;  %2312 = vmatprep.mubr.msk.f32.mxu1 %vm99_vm0, %v93_v37 }
  0x25   :  { %12 = vsyncpa [#allocation3], 0  ;;  %2288 = vmatprep.mubr.msk.f32.mxu0 %vm99_vm0, %v77_v38  ;;  %v78_v40 = vld [vmem:[%s3814_s1 + $0x78] sm:$0xff]  ;;  %v27_v41 = vld [vmem:[%s3813_s0] sm:$0xff]  ;;  %vm775_vm1 = vcmask 64512  }
  0x26   :  { %v742_v42 = vld [vmem:[%s3815_s2] sm:$0xff]  ;;  %v28_v43 = vld [vmem:[%s3813_s0 + $0x8] sm:$0xff]  ;;  %v29_v45 = vld [vmem:[%s3813_s0 + $0x10] sm:$0xff] }
  0x27   :  { %2313 = vmatmul.mubr.msk.f32.gmra.mxu1 %vm99_vm0, %v94_v39  ;;  %v743_v44 = vld [vmem:[%s3815_s2 + $0x8] sm:$0xff]  ;;  %v744_v46 = vld [vmem:[%s3815_s2 + $0x10] sm:$0xff]  ;;  %v30_v47 = vld [vmem:[%s3813_s0 + $0x18] sm:$0xff] }
  0x28   :  { %2289 = vmatmul.mubr.msk.f32.gmra.mxu0 %vm99_vm0, %v78_v40  ;;  %2323 = vmatprep.mubr.msk.f32.mxu1 %vm99_vm0, %v27_v41  ;;  %v745_v48 = vld [vmem:[%s3815_s2 + $0x18] sm:$0xff]  ;;  %v31_v49 = vld [vmem:[%s3813_s0 + $0x20] sm:$0xff]  ;;  %v32_v51 = vld [vmem:[%s3813_s0 + $0x28] sm:$0xff] }
  0x29   :  { %2373 = vmatprep.mubr.msk.f32.mxu0 %vm775_vm1, %v742_v42  ;;  %v746_v50 = vld [vmem:[%s3815_s2 + $0x20] sm:$0xff]  ;;  %v747_v52 = vld [vmem:[%s3815_s2 + $0x28] sm:$0xff]  ;;  %v33_v53 = vld [vmem:[%s3813_s0 + $0x30] sm:$0xff] }
  0x2a   :  { %v748_v54 = vld [vmem:[%s3815_s2 + $0x30] sm:$0xff]  ;;  %v34_v55 = vld [vmem:[%s3813_s0 + $0x38] sm:$0xff]  ;;  %v35_v57 = vld [vmem:[%s3813_s0 + $0x40] sm:$0xff] }
  0x2b   :  { %2324 = vmatmul.mubr.msk.f32.vlgmr.msra.gmra.mxu1 %vm99_vm0, %v28_v43  ;;  %v749_v56 = vld [vmem:[%s3815_s2 + $0x38] sm:$0xff]  ;;  %v750_v58 = vld [vmem:[%s3815_s2 + $0x40] sm:$0xff]  ;;  %v36_v59 = vld [vmem:[%s3813_s0 + $0x48] sm:$0xff] }
  0x2c   :  { %2374 = vmatmul.mubr.msk.f32.vlgmr.msra.gmra.mxu0 %vm775_vm1, %v743_v44  ;;  %2326 = vmatprep.mubr.msk.f32.mxu1 %vm99_vm0, %v29_v45  ;;  %v751_v60 = vld [vmem:[%s3815_s2 + $0x48] sm:$0xff]  ;;  %v37_v61 = vld [vmem:[%s3813_s0 + $0x50] sm:$0xff]  ;;  %v38_v63 = vld [vmem:[%s3813_s0 + $0x58] sm:$0xff] }
  0x2d   :  { %2376 = vmatprep.mubr.msk.f32.mxu0 %vm775_vm1, %v744_v46  ;;  %v752_v62 = vld [vmem:[%s3815_s2 + $0x50] sm:$0xff]  ;;  %v753_v0 = vld [vmem:[%s3815_s2 + $0x58] sm:$0xff]  ;;  %v39_v1 = vld [vmem:[%s3813_s0 + $0x60] sm:$0xff] }
  0x2e   :  { %v754_v2 = vld [vmem:[%s3815_s2 + $0x60] sm:$0xff]  ;;  %v40_v3 = vld [vmem:[%s3813_s0 + $0x68] sm:$0xff]  ;;  %v41_v5 = vld [vmem:[%s3813_s0 + $0x70] sm:$0xff] }
  0x2f   :  { %2327 = vmatmul.mubr.msk.f32.gmra.mxu1 %vm99_vm0, %v30_v47  ;;  %v755_v4 = vld [vmem:[%s3815_s2 + $0x68] sm:$0xff]  ;;  %v756_v6 = vld [vmem:[%s3815_s2 + $0x70] sm:$0xff]  ;;  %v42_v7 = vld [vmem:[%s3813_s0 + $0x78] sm:$0xff] }
  0x30   :  { %2377 = vmatmul.mubr.msk.f32.gmra.mxu0 %vm775_vm1, %v745_v48  ;;  %2329 = vmatprep.mubr.msk.f32.mxu1 %vm99_vm0, %v31_v49  ;;  %v757_v8 = vld [vmem:[%s3815_s2 + $0x78] sm:$0xff]  ;;  %v43_v9 = vld [vmem:[%s3813_s0 + $0x80] sm:$0xff]  ;;  %v44_v11 = vld [vmem:[%s3813_s0 + $0x88] sm:$0xff] }
  0x31   :  { %2379 = vmatprep.mubr.msk.f32.mxu0 %vm775_vm1, %v746_v50  ;;  %v758_v10 = vld [vmem:[%s3815_s2 + $0x80] sm:$0xff]  ;;  %v759_v12 = vld [vmem:[%s3815_s2 + $0x88] sm:$0xff]  ;;  %v45_v13 = vld [vmem:[%s3813_s0 + $0x90] sm:$0xff] }
  0x32   :  { %v760_v14 = vld [vmem:[%s3815_s2 + $0x90] sm:$0xff]  ;;  %v46_v15 = vld [vmem:[%s3813_s0 + $0x98] sm:$0xff]  ;;  %v47_v17 = vld [vmem:[%s3813_s0 + $0xa0] sm:$0xff] }
  0x33   :  { %2330 = vmatmul.mubr.msk.f32.gmra.mxu1 %vm99_vm0, %v32_v51  ;;  %v761_v16 = vld [vmem:[%s3815_s2 + $0x98] sm:$0xff]  ;;  %v762_v18 = vld [vmem:[%s3815_s2 + $0xa0] sm:$0xff]  ;;  %v48_v19 = vld [vmem:[%s3813_s0 + $0xa8] sm:$0xff] }
  0x34   :  { %2380 = vmatmul.mubr.msk.f32.gmra.mxu0 %vm775_vm1, %v747_v52  ;;  %2332 = vmatprep.mubr.msk.f32.mxu1 %vm99_vm0, %v33_v53  ;;  %v763_v20 = vld [vmem:[%s3815_s2 + $0xa8] sm:$0xff]  ;;  %v49_v21 = vld [vmem:[%s3813_s0 + $0xb0] sm:$0xff]  ;;  %v50_v23 = vld [vmem:[%s3813_s0 + $0xb8] sm:$0xff] }
  0x35   :  { %2382 = vmatprep.mubr.msk.f32.mxu0 %vm775_vm1, %v748_v54  ;;  %v764_v22 = vld [vmem:[%s3815_s2 + $0xb0] sm:$0xff]  ;;  %v765_v24 = vld [vmem:[%s3815_s2 + $0xb8] sm:$0xff]  ;;  %v51_v25 = vld [vmem:[%s3813_s0 + $0xc0] sm:$0xff] }
  0x36   :  { %v766_v26 = vld [vmem:[%s3815_s2 + $0xc0] sm:$0xff]  ;;  %v52_v27 = vld [vmem:[%s3813_s0 + $0xc8] sm:$0xff]  ;;  %v53_v29 = vld [vmem:[%s3813_s0 + $0xd0] sm:$0xff] }
  0x37   :  { %2333 = vmatmul.mubr.msk.f32.gmra.mxu1 %vm99_vm0, %v34_v55  ;;  %v767_v28 = vld [vmem:[%s3815_s2 + $0xc8] sm:$0xff]  ;;  %v768_v30 = vld [vmem:[%s3815_s2 + $0xd0] sm:$0xff]  ;;  %v54_v31 = vld [vmem:[%s3813_s0 + $0xd8] sm:$0xff] }
  0x38   :  { %2383 = vmatmul.mubr.msk.f32.gmra.mxu0 %vm775_vm1, %v749_v56  ;;  %2335 = vmatprep.mubr.msk.f32.mxu1 %vm99_vm0, %v35_v57  ;;  %v769_v32 = vld [vmem:[%s3815_s2 + $0xd8] sm:$0xff]  ;;  %v55_v33 = vld [vmem:[%s3813_s0 + $0xe0] sm:$0xff]  ;;  %v56_v35 = vld [vmem:[%s3813_s0 + $0xe8] sm:$0xff] }
  0x39   :  { %2385 = vmatprep.mubr.msk.f32.mxu0 %vm775_vm1, %v750_v58  ;;  %v770_v34 = vld [vmem:[%s3815_s2 + $0xe0] sm:$0xff]  ;;  %v771_v36 = vld [vmem:[%s3815_s2 + $0xe8] sm:$0xff]  ;;  %v57_v37 = vld [vmem:[%s3813_s0 + $0xf0] sm:$0xff] }
  0x3a   :  { %v772_v38 = vld [vmem:[%s3815_s2 + $0xf0] sm:$0xff]  ;;  %v58_v39 = vld [vmem:[%s3813_s0 + $0xf8] sm:$0xff] }
  0x3b   :  { %2336 = vmatmul.mubr.msk.f32.gmra.mxu1 %vm99_vm0, %v36_v59  ;;  %v773_v40 = vld [vmem:[%s3815_s2 + $0xf8] sm:$0xff] }
  0x3c   :  { %2386 = vmatmul.mubr.msk.f32.gmra.mxu0 %vm775_vm1, %v751_v60  ;;  %2338 = vmatprep.mubr.msk.f32.mxu1 %vm99_vm0, %v37_v61 }
  0x3d   :  { %2388 = vmatprep.mubr.msk.f32.mxu0 %vm775_vm1, %v752_v62 }
  0x3f   :  { %2339 = vmatmul.mubr.msk.f32.gmra.mxu1 %vm99_vm0, %v38_v63 }
  0x40   :  { %2389 = vmatmul.mubr.msk.f32.gmra.mxu0 %vm775_vm1, %v753_v0  ;;  %2341 = vmatprep.mubr.msk.f32.mxu1 %vm99_vm0, %v39_v1 }
  0x41   :  { %2391 = vmatprep.mubr.msk.f32.mxu0 %vm775_vm1, %v754_v2 }
  0x43   :  { %2342 = vmatmul.mubr.msk.f32.gmra.mxu1 %vm99_vm0, %v40_v3 }
  0x44   :  { %2392 = vmatmul.mubr.msk.f32.gmra.mxu0 %vm775_vm1, %v755_v4  ;;  %2344 = vmatprep.mubr.msk.f32.mxu1 %vm99_vm0, %v41_v5 }
  0x45   :  { %2394 = vmatprep.mubr.msk.f32.mxu0 %vm775_vm1, %v756_v6 }
  0x47   :  { %2345 = vmatmul.mubr.msk.f32.gmra.mxu1 %vm99_vm0, %v42_v7 }
  0x48   :  { %2395 = vmatmul.mubr.msk.f32.gmra.mxu0 %vm775_vm1, %v757_v8  ;;  %2347 = vmatprep.mubr.msk.f32.mxu1 %vm99_vm0, %v43_v9 }
  0x49   :  { %2397 = vmatprep.mubr.msk.f32.mxu0 %vm775_vm1, %v758_v10 }
  0x4b   :  { %2348 = vmatmul.mubr.msk.f32.gmra.mxu1 %vm99_vm0, %v44_v11 }
  0x4c   :  { %2398 = vmatmul.mubr.msk.f32.gmra.mxu0 %vm775_vm1, %v759_v12  ;;  %2350 = vmatprep.mubr.msk.f32.mxu1 %vm99_vm0, %v45_v13  ;;  %v3091_v12 = vld [vmem:[%s3819_s6] ss:$0 sm:$0xff]  ;;  %s2584_s6 = smov [#allocation2]  }
  0x4d   :  { %2400 = vmatprep.mubr.msk.f32.mxu0 %vm775_vm1, %v760_v14  ;;  %s2045_s24 = sshll.u32 %s2584_s6, 4  ;;  %s2046_s24 = int_to_ptr.vmem [resolvable:$true] %s2045_s24 }
  0x4e   :  { %s2561_s25 = scalar_lea.vmem %s2046_s24, 4096  ;;  %p2566_p1 = scmp.lt.s32.totalorder %s2046_s24, %s2046_s24 }
  0x4f   :  { %2351 = vmatmul.mubr.msk.f32.gmra.mxu1 %vm99_vm0, %v46_v15  ;;  %p2562_p0 = scmp.ne.s32.totalorder %s2046_s24, %s2561_s25  ;;  %p2567_p2 = scmp.lt.s32.totalorder %s2561_s25, %s2561_s25 }
  0x50   :  { %2401 = vmatmul.mubr.msk.f32.gmra.mxu0 %vm775_vm1, %v761_v16  ;;  %2353 = vmatprep.mubr.msk.f32.mxu1 %vm99_vm0, %v47_v17 }
  0x51   :  { %2403 = vmatprep.mubr.msk.f32.mxu0 %vm775_vm1, %v762_v18  ;;  %p2568_p3 = por %p2567_p2, %p2566_p1 }
  0x53   :  { %2354 = vmatmul.mubr.msk.f32.gmra.mxu1 %vm99_vm0, %v48_v19  ;;  %p2569_p4 = pnand %p2568_p3, %p2562_p0 }
  0x54   :  { %2404 = vmatmul.mubr.msk.f32.gmra.mxu0 %vm775_vm1, %v763_v20  ;;  %2356 = vmatprep.mubr.msk.f32.mxu1 %vm99_vm0, %v49_v21 }
  0x55   :  { %2406 = vmatprep.mubr.msk.f32.mxu0 %vm775_vm1, %v764_v22 }
  0x57   :  { %2357 = vmatmul.mubr.msk.f32.gmra.mxu1 %vm99_vm0, %v50_v23  ;;  %v1456_v23 = vlaneseq }
  0x58   :  { %2407 = vmatmul.mubr.msk.f32.gmra.mxu0 %vm775_vm1, %v765_v24  ;;  %2359 = vmatprep.mubr.msk.f32.mxu1 %vm99_vm0, %v51_v25 }
  0x59   :  { %2409 = vmatprep.mubr.msk.f32.mxu0 %vm775_vm1, %v766_v26 }
  0x5b   :  { %2360 = vmatmul.mubr.msk.f32.gmra.mxu1 %vm99_vm0, %v52_v27 }
  0x5c   :  { %2410 = vmatmul.mubr.msk.f32.gmra.mxu0 %vm775_vm1, %v767_v28  ;;  %2362 = vmatprep.mubr.msk.f32.mxu1 %vm99_vm0, %v53_v29 }
  0x5d   :  { %2412 = vmatprep.mubr.msk.f32.mxu0 %vm775_vm1, %v768_v30 }
  0x5f   :  { %2363 = vmatmul.mubr.msk.f32.gmra.mxu1 %vm99_vm0, %v54_v31 }
  0x60   :  { %2413 = vmatmul.mubr.msk.f32.gmra.mxu0 %vm775_vm1, %v769_v32  ;;  %2365 = vmatprep.mubr.msk.f32.mxu1 %vm99_vm0, %v55_v33 }
  0x61   :  { %2415 = vmatprep.mubr.msk.f32.mxu0 %vm775_vm1, %v770_v34 }
  0x63   :  { %2366 = vmatmul.mubr.msk.f32.gmra.mxu1 %vm99_vm0, %v56_v35 }
  0x64   :  { %2416 = vmatmul.mubr.msk.f32.gmra.mxu0 %vm775_vm1, %v771_v36  ;;  %2368 = vmatprep.mubr.msk.f32.mxu1 %vm99_vm0, %v57_v37  ;;  %v1457_v36 = vand.u32 127, %v1456_v23 }
  0x65   :  { %2418 = vmatprep.mubr.msk.f32.mxu0 %vm775_vm1, %v772_v38 }
  0x66   :  { %vm1458_vm2 = vcmp.lt.s32.totalorder %v1457_v36, 32 }
  0x67   :  { %2369 = vmatmul.mubr.msk.f32.gmra.mxu1 %vm99_vm0, %v58_v39 }
  0x68   :  { %2419 = vmatmul.mubr.msk.f32.gmra.mxu0 %vm775_vm1, %v773_v40 }
  0xcb   :  { %v3038_v41 = vpop.f32.mrf.mxu1 }
  0xcc   :  { %v2269_v42 = vpop.f32.mrf.mxu0 }
  0xcd   :  { %v3040_v43 = vpop.f32.mrf.mxu1 }
  0xce   :  { %v262_v44 = vpop.f32.mrf.mxu0 }
  0xcf   :  { %v3042_v45 = vpop.f32.mrf.mxu1 }
  0xd0   :  { %v2272_v46 = vpop.f32.mrf.mxu0 }
  0xd1   :  { %v3044_v47 = vpop.f32.mrf.mxu1 }
  0xd2   :  { %v272_v48 = vpop.f32.mrf.mxu0 }
  0xd3   :  { %v3046_v49 = vpop.f32.mrf.mxu1 }
  0xd4   :  { %v2275_v50 = vpop.f32.mrf.mxu0 }
  0xd5   :  { %v3048_v51 = vpop.f32.mrf.mxu1 }
  0xd6   :  { %v282_v52 = vpop.f32.mrf.mxu0 }
  0xd7   :  { %v3050_v53 = vpop.f32.mrf.mxu1 }
  0xd8   :  { %v2278_v54 = vpop.f32.mrf.mxu0 }
  0xd9   :  { %v3052_v55 = vpop.f32.mrf.mxu1 }
  0xda   :  { %v3054_v56 = vpop.f32.mrf.mxu0 }
  0xdb   :  { %v3056_v57 = vpop.f32.mrf.mxu1 }
  0xdc   :  { %v3058_v58 = vpop.f32.mrf.mxu0 }
  0xdd   :  { %v3060_v59 = vpop.f32.mrf.mxu1 }
  0xde   :  { %v3062_v60 = vpop.f32.mrf.mxu0 }
  0xdf   :  { %v3064_v61 = vpop.f32.mrf.mxu1 }
  0xe0   :  { %v3066_v62 = vpop.f32.mrf.mxu0 }
  0xe1   :  { %v3068_v63 = vpop.f32.mrf.mxu1 }
  0xe2   :  { %v3070_v0 = vpop.f32.mrf.mxu0 }
  0xe3   :  { %v3072_v1 = vpop.f32.mrf.mxu1 }
  0xe4   :  { %v3074_v2 = vpop.f32.mrf.mxu0 }
  0xe5   :  { %v3076_v3 = vpop.f32.mrf.mxu1 }
  0xe6   :  { %v3078_v4 = vpop.f32.mrf.mxu0 }
  0xe7   :  { %v3080_v5 = vpop.f32.mrf.mxu1 }
  0xe8   :  { %v3082_v6 = vpop.f32.mrf.mxu0 }
  0xe9   :  { %v3084_v7 = vpop.f32.mrf.mxu1 }
  0xea   :  { %v3086_v8 = vpop.f32.mrf.mxu0 }
  0xeb   :  { %v2325_v9 = vpop.f32.mrf.mxu1 }
  0xec   :  { %v589_v10 = vadd.f32 %v2325_v9, %v2269_v42  ;;  %v2375_v11 = vpop.f32.mrf.mxu0 }
  0xed   :  { %v583_v13 = vpop.f32.mrf.mxu1 }
  0xee   :  { %v1098_v14 = vadd.f32 %v2375_v11, %v589_v10  ;;  %v584_v15 = vadd.f32 %v583_v13, %v262_v44  ;;  %v938_v16 = vpop.f32.mrf.mxu0 }
  0xef   :  { %v2328_v17 = vpop.f32.mrf.mxu1 }
  0xf0   :  { %v3094_v18 = vadd.f32 %v3091_v12, %v1098_v14  ;;  %v1097_v19 = vadd.f32 %v938_v16, %v584_v15  ;;  %v599_v20 = vadd.f32 %v2328_v17, %v2272_v46  ;;  %v2378_v21 = vpop.f32.mrf.mxu0 }
  0xf1   :  { %v593_v22 = vpop.f32.mrf.mxu1 }
  0xf2   :  { %v3097_v24 = vadd.f32 %v3091_v12, %v1097_v19  ;;  %v1100_v25 = vadd.f32 %v2378_v21, %v599_v20  ;;  %v594_v26 = vadd.f32 %v593_v22, %v272_v48  ;;  %v948_v27 = vpop.f32.mrf.mxu0  ;;  %v1201_v29 = vmul.f32 0.044715, %v3094_v18 }
  0xf3   :  { %v2331_v28 = vpop.f32.mrf.mxu1 }
  0xf4   :  { %v3101_v30 = vadd.f32 %v3091_v12, %v1100_v25  ;;  %v1099_v31 = vadd.f32 %v948_v27, %v594_v26  ;;  %v609_v32 = vadd.f32 %v2331_v28, %v2275_v50  ;;  %v2381_v33 = vpop.f32.mrf.mxu0  ;;  %v1233_v35 = vmul.f32 %v1201_v29, %v3094_v18 }
  0xf5   :  { %v603_v34 = vpop.f32.mrf.mxu1  ;;  %v1200_v37 = vmul.f32 0.044715, %v3097_v24 }
  0xf6   :  { %v1203_v38 = vmul.f32 0.044715, %v3101_v30  ;;  %v3108_v39 = vadd.f32 %v3091_v12, %v1099_v31  ;;  %v1102_v40 = vadd.f32 %v2381_v33, %v609_v32  ;;  %v604_v42 = vadd.f32 %v603_v34, %v282_v52  ;;  %v958_v44 = vpop.f32.mrf.mxu0 }
  0xf7   :  { %v2334_v46 = vpop.f32.mrf.mxu1  ;;  %v1265_v48 = vmul.f32 %v1233_v35, %v3094_v18  ;;  %v1232_v50 = vmul.f32 %v1200_v37, %v3097_v24 }
  0xf8   :  { %v1202_v9 = vmul.f32 0.044715, %v3108_v39  ;;  %v1101_v10 = vadd.f32 %v958_v44, %v604_v42  ;;  %v619_v11 = vadd.f32 %v2334_v46, %v2278_v54  ;;  %v2384_v13 = vpop.f32.mrf.mxu0  ;;  %v1235_v17 = vmul.f32 %v1203_v38, %v3101_v30 }
  0xf9   :  { %v613_v14 = vpop.f32.mrf.mxu1  ;;  %v1297_v15 = vadd.f32 %v1265_v48, %v3094_v18  ;;  %v1264_v16 = vmul.f32 %v1232_v50, %v3097_v24  ;;  %v3117_v52 = vadd.f32 %v3091_v12, %v1102_v40 }
  0xfa   :  { %v1140_v19 = vadd.f32 %v3091_v12, %v1101_v10  ;;  %v1104_v20 = vadd.f32 %v2384_v13, %v619_v11  ;;  %v614_v21 = vadd.f32 %v613_v14, %v3054_v56  ;;  %v968_v22 = vpop.f32.mrf.mxu0  ;;  %v1234_v27 = vmul.f32 %v1202_v9, %v3108_v39 }
  0xfb   :  { %v2337_v25 = vpop.f32.mrf.mxu1  ;;  %v1329_v54 = vmul.f32 0.7978846, %v1297_v15  ;;  %v1296_v26 = vadd.f32 %v1264_v16, %v3097_v24  ;;  %v1267_v28 = vmul.f32 %v1235_v17, %v3101_v30  ;;  %v1205_v38 = vmul.f32 0.044715, %v3117_v52 }
  0xfc   :  { %v1204_v29 = vmul.f32 0.044715, %v1140_v19  ;;  %v1103_v31 = vadd.f32 %v968_v22, %v614_v21  ;;  %v629_v32 = vadd.f32 %v2337_v25, %v3058_v58  ;;  %v2387_v33 = vpop.f32.mrf.mxu0  ;;  %v1266_v37 = vmul.f32 %v1234_v27, %v3108_v39 }
  0xfd   :  { %v623_v34 = vpop.f32.mrf.mxu1  ;;  %2433 = vtanh.f32 %v1329_v54  ;;  %v1328_v35 = vmul.f32 0.7978846, %v1296_v26  ;;  %v1299_v56 = vadd.f32 %v1267_v28, %v3101_v30  ;;  %v3130_v46 = vadd.f32 %v3091_v12, %v1104_v20 }
  0xfe   :  { %v1142_v40 = vadd.f32 %v3091_v12, %v1103_v31  ;;  %v1106_v42 = vadd.f32 %v2387_v33, %v629_v32  ;;  %v978_v44 = vpop.f32.mrf.mxu0  ;;  %v1298_v58 = vadd.f32 %v1266_v37, %v3108_v39  ;;  %v624_v9 = vadd.f32 %v623_v34, %v3062_v60 }
  0xff   :  { %v2340_v48 = vpop.f32.mrf.mxu1  ;;  %2435 = vtanh.f32 %v1328_v35  ;;  %v1331_v50 = vmul.f32 0.7978846, %v1299_v56  ;;  %v2583_v11 = vmov 0.0   ;;  %v1236_v17 = vmul.f32 %v1204_v29, %v1140_v19 }
 0x100   :  { %v2390_v10 = vpop.f32.mrf.mxu0  ;;  %v3135_v13 = vsel %vm1458_vm2, 1.0, %v2583_v11  ;;  %v1206_v14 = vmul.f32 0.044715, %v1142_v40  ;;  %v1330_v16 = vmul.f32 0.7978846, %v1298_v58  ;;  %v3138_v20 = vadd.f32 %v3091_v12, %v1106_v42 }
 0x101   :  { %v633_v15 = vpop.f32.mrf.mxu1  ;;  %2437 = vtanh.f32 %v1331_v50  ;;  %v1169_v22 = vmul.f32 0.5, %v3094_v18  ;;  %v3142_v25 = vmul.f32 0.5, %v3097_v24  ;;  %v3145_v60 = vmul.f32 0.5, %v3101_v30 }
 0x102   :  { %v988_v21 = vpop.f32.mrf.mxu0  ;;  %v1207_v36 = vmul.f32 0.044715, %v3130_v46  ;;  %2439 = vtanh.f32 %v1330_v16  ;;  %v1268_v26 = vmul.f32 %v1236_v17, %v1140_v19  ;;  %v1237_v27 = vmul.f32 %v1205_v38, %v3117_v52 }
 0x103   :  { %v2343_v54 = vpop.f32.mrf.mxu1  ;;  %v1105_v28 = vadd.f32 %v978_v44, %v624_v9  ;;  %v639_v29 = vadd.f32 %v2340_v48, %v3066_v62  ;;  %v3151_v32 = vmul.f32 0.5, %v3108_v39  ;;  %v3153_v18 = vmul.f32 0.5, %v1140_v19 }
 0x104   :  { %v2393_v31 = vpop.f32.mrf.mxu0  ;;  %v1300_v33 = vadd.f32 %v1268_v26, %v1140_v19  ;;  %v3156_v30 = vmul.f32 0.5, %v3117_v52  ;;  %v1269_v34 = vmul.f32 %v1237_v27, %v3117_v52  ;;  %v1238_v35 = vmul.f32 %v1206_v14, %v1142_v40 }
 0x105   :  { %v643_v24 = vpop.f32.mrf.mxu1  ;;  %v3160_v37 = vmul.f32 0.044715, %v3138_v20  ;;  %v634_v56 = vadd.f32 %v633_v15, %v3070_v0  ;;  %v649_v62 = vadd.f32 %v2343_v54, %v3074_v2  ;;  %v1239_v58 = vmul.f32 %v1207_v36, %v3130_v46 }
 0x106   :  { %v644_v39 = vadd.f32 %v643_v24, %v3078_v4  ;;  %v998_v38 = vpop.f32.mrf.mxu0  ;;  %v1332_v44 = vmul.f32 0.7978846, %v1300_v33  ;;  %v1301_v19 = vadd.f32 %v1269_v34, %v3117_v52  ;;  %v1270_v48 = vmul.f32 %v1238_v35, %v1142_v40 }
 0x107   :  { %v2346_v42 = vpop.f32.mrf.mxu1  ;;  %v3168_v50 = vadd.f32 %v3091_v12, %v1105_v28  ;;  %v1108_v9 = vadd.f32 %v2390_v10, %v639_v29  ;;  %v3171_v0 = vmul.f32 0.5, %v1142_v40  ;;  %v1271_v16 = vmul.f32 %v1239_v58, %v3130_v46 }
 0x108   :  { %v659_v11 = vadd.f32 %v2346_v42, %v3082_v6  ;;  %v2396_v14 = vpop.f32.mrf.mxu0  ;;  %2441 = vtanh.f32 %v1332_v44  ;;  %v1333_v4 = vmul.f32 0.7978846, %v1301_v19  ;;  %v1302_v15 = vadd.f32 %v1270_v48, %v1142_v40 }
 0x109   :  { %v653_v2 = vpop.f32.mrf.mxu1  ;;  %v1107_v52 = vadd.f32 %v988_v21, %v634_v56  ;;  %v1110_v54 = vadd.f32 %v2393_v31, %v649_v62  ;;  %v1109_v26 = vadd.f32 %v998_v38, %v644_v39  ;;  %v1303_v29 = vadd.f32 %v1271_v16, %v3130_v46 }
 0x10a   :  { %v2434_v17 = vpop.eup %2433  ;;  %v654_v36 = vadd.f32 %v653_v2, %v3086_v8  ;;  %v1008_v27 = vpop.f32.mrf.mxu0  ;;  %2443 = vtanh.f32 %v1333_v4  ;;  %v1334_v6 = vmul.f32 0.7978846, %v1302_v15  ;;  %v1208_v33 = vmul.f32 0.044715, %v3168_v50 }
 0x10b   :  { %v2349_v28 = vpop.f32.mrf.mxu1  ;;  %v1393_v10 = vadd.f32 1.0, %v2434_v17  ;;  %v3178_v40 = vadd.f32 %v3091_v12, %v1108_v9  ;;  %v1112_v34 = vadd.f32 %v2396_v14, %v659_v11  ;;  %v1335_v62 = vmul.f32 0.7978846, %v1303_v29 }
 0x10c   :  { %v2436_v24 = vpop.eup %2435  ;;  %v1111_v35 = vadd.f32 %v1008_v27, %v654_v36  ;;  %v2399_v21 = vpop.f32.mrf.mxu0  ;;  %2445 = vtanh.f32 %v1334_v6  ;;  %v3183_v38 = vadd.f32 %v3091_v12, %v1107_v52  ;;  %v3186_v42 = vadd.f32 %v3091_v12, %v1110_v54 }
 0x10d   :  { %v663_v31 = vpop.f32.mrf.mxu1  ;;  %v3180_v56 = vmul.f32 %v1393_v10, %v1169_v22  ;;  %v1392_v8 = vadd.f32 1.0, %v2436_v24  ;;  %v3189_v44 = vadd.f32 %v3091_v12, %v1109_v26  ;;  %v669_v19 = vadd.f32 %v2349_v28, %v3038_v41 }
 0x10e   :  { %v2438_v39 = vpop.eup %2437  ;;  %v1018_v48 = vpop.f32.mrf.mxu0  ;;  %2447 = vtanh.f32 %v1335_v62  ;;  %v3198_v2 = vadd.f32 %v3091_v12, %v1112_v34  ;;  %v3201_v4 = vadd.f32 %v3091_v12, %v1111_v35  ;;  %v3205_v16 = vmul.f32 0.5, %v3130_v46 }
 0x10f   :  { %v2352_v58 = vpop.f32.mrf.mxu1  ;;  %v1462_v22 = vmul.f32 %v3135_v13, %v3180_v56  ;;  %v3195_v9 = vmul.f32 %v1392_v8, %v3142_v25  ;;  %v1395_v11 = vadd.f32 1.0, %v2438_v39  ;;  %v2440_v14 = vpop.eup %2439  ;;  %v3208_v17 = vmul.f32 0.044715, %v3178_v40 }
 0x110   :  { %v679_v15 = vadd.f32 %v2352_v58, %v3042_v45  ;;  %v2402_v41 = vpop.f32.mrf.mxu0  ;;  %v1394_v54 = vadd.f32 1.0, %v2440_v14  ;;  %v1210_v36 = vmul.f32 0.044715, %v3183_v38  ;;  %v1114_v27 = vadd.f32 %v2399_v21, %v669_v19 }
 0x111   :  { %1495 = vadd.xlane.f32.xlu1 %v1462_v22  ;;  %v673_v25 = vpop.f32.mrf.mxu1  ;;  %v1461_v52 = vmul.f32 %v3135_v13, %v3195_v9  ;;  %v3213_v26 = vmul.f32 %v1395_v11, %v3145_v60  ;;  %v664_v45 = vadd.f32 %v663_v31, %v3040_v43  ;;  %v3220_v10 = vmul.f32 0.044715, %v3186_v42 }
 0x112   :  { %v1116_v28 = vadd.f32 %v2402_v41, %v679_v15  ;;  %v3217_v46 = vpop.f32.mrf.mxu0  ;;  %v3223_v6 = vmul.f32 0.044715, %v3189_v44  ;;  %v3226_v24 = vmul.f32 %v1394_v54, %v3151_v32  ;;  %v1240_v60 = vmul.f32 %v1208_v33, %v3168_v50 }
 0x113   :  { %1493 = vadd.xlane.f32.xlu0 %v1461_v52  ;;  %v2355_v29 = vpop.f32.mrf.mxu1  ;;  %v3230_v34 = vmul.f32 0.044715, %v3198_v2  ;;  %v3233_v43 = vmul.f32 0.044715, %v3201_v4  ;;  %v1464_v32 = vmul.f32 %v3135_v13, %v3213_v26  ;;  %v1241_v39 = vmul.f32 %v3160_v37, %v3138_v20 }
 0x114   :  { %v3236_v35 = vadd.f32 %v3091_v12, %v1116_v28  ;;  %v689_v21 = vadd.f32 %v2355_v29, %v3046_v49  ;;  %v2405_v31 = vpop.f32.mrf.mxu0  ;;  %v1463_v62 = vmul.f32 %v3135_v13, %v3226_v24  ;;  %v1272_v33 = vmul.f32 %v1240_v60, %v3168_v50 }
 0x115   :  { %v683_v8 = vpop.f32.mrf.mxu1  ;;  %v2442_v19 = vpop.eup %2441  ;;  %v3247_v58 = vadd.f32 %v3091_v12, %v1114_v27  ;;  %v1113_v22 = vadd.f32 %v1018_v48, %v664_v45  ;;  %v3251_v52 = vmul.f32 0.5, %v3168_v50  ;;  %v1273_v37 = vmul.f32 %v1241_v39, %v3138_v20 }
 0x116   :  { %v1118_v11 = vadd.f32 %v2405_v31, %v689_v21  ;;  %v684_v49 = vadd.f32 %v683_v8, %v3048_v51  ;;  %v1038_v14 = vpop.f32.mrf.mxu0  ;;  %1497 = vadd.xlane.f32.xlu1 %v1463_v62  ;;  %v1396_v41 = vadd.f32 1.0, %v2442_v19  ;;  %v1304_v54 = vadd.f32 %v1272_v33, %v3168_v50 }
 0x117   :  { %1499 = vadd.xlane.f32.xlu0 %v1464_v32  ;;  %v2358_v15 = vpop.f32.mrf.mxu1  ;;  %v2444_v28 = vpop.eup %2443  ;;  %v674_v27 = vadd.f32 %v673_v25, %v3044_v47  ;;  %v1305_v50 = vadd.f32 %v1273_v37, %v3138_v20  ;;  %v1242_v39 = vmul.f32 %v1210_v36, %v3183_v38 }
 0x118   :  { %v3257_v48 = vadd.f32 %v3091_v12, %v1118_v11  ;;  %v1117_v45 = vadd.f32 %v1038_v14, %v684_v49  ;;  %v699_v51 = vadd.f32 %v2358_v15, %v3050_v53  ;;  %v2408_v29 = vpop.f32.mrf.mxu0  ;;  %v3261_v21 = vmul.f32 %v1396_v41, %v3153_v18 }
 0x119   :  { %v693_v60 = vpop.f32.mrf.mxu1  ;;  %v1397_v31 = vadd.f32 1.0, %v2444_v28  ;;  %v1336_v8 = vmul.f32 0.7978846, %v1304_v54  ;;  %v2446_v62 = vpop.eup %2445  ;;  %v3275_v14 = vadd.f32 %v3091_v12, %v1113_v22  ;;  %v1115_v22 = vadd.f32 %v3217_v46, %v674_v27 }
 0x11a   :  { %v3265_v32 = vadd.f32 %v3091_v12, %v1117_v45  ;;  %v1120_v47 = vadd.f32 %v2408_v29, %v699_v51  ;;  %v694_v25 = vadd.f32 %v693_v60, %v3052_v55  ;;  %v1048_v33 = vpop.f32.mrf.mxu0  ;;  %v1465_v53 = vmul.f32 %v3135_v13, %v3261_v21 }
 0x11b   :  { %v3272_v18 = vmul.f32 %v1397_v31, %v3156_v30  ;;  %v2361_v19 = vpop.f32.mrf.mxu1  ;;  %v1398_v11 = vadd.f32 1.0, %v2446_v62  ;;  %2449 = vtanh.f32 %v1336_v8  ;;  %v2448_v49 = vpop.eup %2447  ;;  %v1337_v45 = vmul.f32 0.7978846, %v1305_v50 }
 0x11c   :  { %v3278_v15 = vadd.f32 %v3091_v12, %v1120_v47  ;;  %v1119_v55 = vadd.f32 %v1048_v33, %v694_v25  ;;  %v709_v41 = vadd.f32 %v2361_v19, %v3056_v57  ;;  %v2411_v36 = vpop.f32.mrf.mxu0  ;;  %1501 = vadd.xlane.f32.xlu1 %v1465_v53  ;;  %v1399_v28 = vadd.f32 1.0, %v2448_v49 }
 0x11d   :  { %v1466_v54 = vmul.f32 %v3135_v13, %v3272_v18  ;;  %v703_v30 = vpop.f32.mrf.mxu1  ;;  %v3284_v37 = vmul.f32 %v1398_v11, %v3171_v0  ;;  %2451 = vtanh.f32 %v1337_v45  ;;  %v1274_v50 = vmul.f32 %v1242_v39, %v3183_v38 }
 0x11e   :  { %v3288_v51 = vadd.f32 %v3091_v12, %v1119_v55  ;;  %v1122_v29 = vadd.f32 %v2411_v36, %v709_v41  ;;  %v704_v60 = vadd.f32 %v703_v30, %v3060_v59  ;;  %v1058_v57 = vpop.f32.mrf.mxu0  ;;  %v3294_v8 = vmul.f32 %v1399_v28, %v3205_v16 }
 0x11f   :  { %1503 = vadd.xlane.f32.xlu0 %v1466_v54  ;;  %v1467_v31 = vmul.f32 %v3135_v13, %v3284_v37  ;;  %v2364_v0 = vpop.f32.mrf.mxu1  ;;  %v3298_v46 = vmul.f32 0.044715, %v3247_v58  ;;  %v3307_v33 = vmul.f32 0.5, %v3138_v20  ;;  %v1306_v39 = vadd.f32 %v1274_v50, %v3183_v38 }
 0x120   :  { %v3301_v27 = vadd.f32 %v3091_v12, %v1122_v29  ;;  %v1121_v62 = vadd.f32 %v1058_v57, %v704_v60  ;;  %v719_v59 = vadd.f32 %v2364_v0, %v3064_v61  ;;  %v2414_v47 = vpop.f32.mrf.mxu0  ;;  %v1468_v25 = vmul.f32 %v3135_v13, %v3294_v8 }
 0x121   :  { %1505 = vadd.xlane.f32.xlu1 %v1467_v31  ;;  %v713_v16 = vpop.f32.mrf.mxu1  ;;  %v1243_v53 = vmul.f32 %v3208_v17, %v3178_v40  ;;  %v3313_v19 = vadd.f32 %v3091_v12, %v1115_v22  ;;  %v3320_v41 = vmul.f32 0.044715, %v3275_v14  ;;  %v1338_v36 = vmul.f32 0.7978846, %v1306_v39 }
 0x122   :  { %v3316_v11 = vadd.f32 %v3091_v12, %v1121_v62  ;;  %v1124_v61 = vadd.f32 %v2414_v47, %v719_v59  ;;  %v714_v49 = vadd.f32 %v713_v16, %v3068_v63  ;;  %v1068_v55 = vpop.f32.mrf.mxu0  ;;  %v1244_v17 = vmul.f32 %v3223_v6, %v3189_v44 }
 0x123   :  { %1507 = vadd.xlane.f32.xlu0 %v1468_v25  ;;  %v2367_v20 = vpop.f32.mrf.mxu1  ;;  %v1275_v54 = vmul.f32 %v1243_v53, %v3178_v40  ;;  %v3330_v63 = vmul.f32 0.5, %v3183_v38  ;;  %v3333_v29 = vmul.f32 0.044715, %v3236_v35  ;;  %2453 = vtanh.f32 %v1338_v36 }
 0x124   :  { %v3326_v30 = vadd.f32 %v3091_v12, %v1124_v61  ;;  %v1123_v28 = vadd.f32 %v1068_v55, %v714_v49  ;;  %v729_v45 = vadd.f32 %v2367_v20, %v3072_v1  ;;  %v2417_v22 = vpop.f32.mrf.mxu0  ;;  %v1276_v31 = vmul.f32 %v1244_v17, %v3189_v44 }
 0x125   :  { %v723_v60 = vpop.f32.mrf.mxu1  ;;  %v1307_v57 = vadd.f32 %v1275_v54, %v3178_v40  ;;  %v1218_v6 = vmul.f32 0.044715, %v3313_v19  ;;  %v3343_v38 = vmul.f32 0.044715, %v3257_v48  ;;  %v1245_v16 = vmul.f32 %v3220_v10, %v3186_v42 }
 0x126   :  { %v3339_v0 = vadd.f32 %v3091_v12, %v1123_v28  ;;  %v1126_v50 = vadd.f32 %v2417_v22, %v729_v45  ;;  %v724_v1 = vadd.f32 %v723_v60, %v3076_v3  ;;  %v1078_v62 = vpop.f32.mrf.mxu0  ;;  %v1308_v25 = vadd.f32 %v1276_v31, %v3189_v44 }
 0x127   :  { %v1339_v59 = vmul.f32 0.7978846, %v1307_v57  ;;  %v2370_v47 = vpop.f32.mrf.mxu1  ;;  %v1220_v53 = vmul.f32 0.044715, %v3265_v32  ;;  %v1277_v17 = vmul.f32 %v1245_v16, %v3186_v42  ;;  %v3355_v28 = vmul.f32 0.044715, %v3278_v15 }
 0x128   :  { %v2450_v39 = vpop.eup %2449  ;;  %v3350_v61 = vadd.f32 %v3091_v12, %v1126_v50  ;;  %v1125_v49 = vadd.f32 %v1078_v62, %v724_v1  ;;  %v739_v3 = vadd.f32 %v2370_v47, %v3080_v5  ;;  %v2420_v55 = vpop.f32.mrf.mxu0  ;;  %v1340_v54 = vmul.f32 0.7978846, %v1308_v25 }
 0x129   :  { %v1400_v20 = vadd.f32 1.0, %v2450_v39  ;;  %2455 = vtanh.f32 %v1339_v59  ;;  %v733_v36 = vpop.f32.mrf.mxu1  ;;  %v1309_v57 = vadd.f32 %v1277_v17, %v3186_v42  ;;  %v1246_v31 = vmul.f32 %v3233_v43, %v3201_v4 }
 0x12a   :  { %v3358_v10 = vadd.f32 %v3091_v12, %v1125_v49  ;;  %v1128_v45 = vadd.f32 %v2420_v55, %v739_v3  ;;  %v734_v22 = vadd.f32 %v733_v36, %v3084_v7  ;;  %v1088_v5 = vpop.f32.mrf.mxu0  ;;  %2457 = vtanh.f32 %v1340_v54  ;;  %v2452_v50 = vpop.eup %2451 }
 0x12b   :  { %v3362_v60 = vmul.f32 %v1400_v20, %v3251_v52  ;;  %v3368_v1 = vmul.f32 0.044715, %v3288_v51  ;;  %v1179_v62 = vmul.f32 0.5, %v3178_v40  ;;  %v1401_v47 = vadd.f32 1.0, %v2452_v50 }
 0x12c   :  { %v3372_v59 = vadd.f32 %v3091_v12, %v1128_v45  ;;  %v1127_v7 = vadd.f32 %v1088_v5, %v734_v22  ;;  %v1341_v25 = vmul.f32 0.7978846, %v1309_v57  ;;  %v1278_v16 = vmul.f32 %v1246_v31, %v3201_v4 }
 0x12d   :  { %v1469_v52 = vmul.f32 %v3135_v13, %v3362_v60  ;;  %v3378_v39 = vmul.f32 0.044715, %v3301_v27  ;;  %v1180_v49 = vmul.f32 0.5, %v3189_v44  ;;  %v1247_v40 = vmul.f32 %v3230_v34, %v3198_v2 }
 0x12e   :  { %v3381_v43 = vadd.f32 %v3091_v12, %v1127_v7  ;;  %v3387_v3 = vmul.f32 %v1401_v47, %v3307_v33  ;;  %2459 = vtanh.f32 %v1341_v25  ;;  %v1310_v55 = vadd.f32 %v1278_v16, %v3201_v4 }
 0x12f   :  { %1509 = vadd.xlane.f32.xlu1 %v1469_v52  ;;  %v1248_v20 = vmul.f32 %v3320_v41, %v3275_v14  ;;  %v1224_v36 = vmul.f32 0.044715, %v3316_v11  ;;  %v3394_v12 = vmul.f32 0.5, %v3186_v42  ;;  %v1279_v44 = vmul.f32 %v1247_v40, %v3198_v2 }
 0x130   :  { %v1249_v34 = vmul.f32 %v3298_v46, %v3247_v58  ;;  %v3400_v54 = vmul.f32 0.044715, %v3326_v30  ;;  %v1470_v33 = vmul.f32 %v3135_v13, %v3387_v3  ;;  %v1342_v17 = vmul.f32 0.7978846, %v1310_v55  ;;  %v2454_v41 = vpop.eup %2453 }
 0x131   :  { %v1280_v45 = vmul.f32 %v1248_v20, %v3275_v14  ;;  %v3406_v22 = vmul.f32 0.5, %v3201_v4  ;;  %v1311_v42 = vadd.f32 %v1279_v44, %v3198_v2  ;;  %v1250_v57 = vmul.f32 %v1218_v6, %v3313_v19 }
 0x132   :  { %v1281_v5 = vmul.f32 %v1249_v34, %v3247_v58  ;;  %1511 = vadd.xlane.f32.xlu0 %v1470_v33  ;;  %v1402_v46 = vadd.f32 1.0, %v2454_v41  ;;  %2461 = vtanh.f32 %v1342_v17  ;;  %v1251_v50 = vmul.f32 %v3333_v29, %v3236_v35 }
 0x133   :  { %v1312_v31 = vadd.f32 %v1280_v45, %v3275_v14  ;;  %v3415_v7 = vmul.f32 0.044715, %v3339_v0  ;;  %v1343_v52 = vmul.f32 0.7978846, %v1311_v42  ;;  %v1282_v47 = vmul.f32 %v1250_v57, %v3313_v19 }
 0x134   :  { %v1313_v4 = vadd.f32 %v1281_v5, %v3247_v58  ;;  %v3420_v25 = vmul.f32 %v1402_v46, %v3330_v63  ;;  %v1283_v16 = vmul.f32 %v1251_v50, %v3236_v35  ;;  %v1252_v40 = vmul.f32 %v1220_v53, %v3265_v32 }
 0x135   :  { %v1344_v6 = vmul.f32 0.7978846, %v1312_v31  ;;  %v3425_v20 = vmul.f32 0.044715, %v3350_v61  ;;  %2463 = vtanh.f32 %v1343_v52  ;;  %v1314_v44 = vadd.f32 %v1282_v47, %v3313_v19 }
 0x136   :  { %v2456_v55 = vpop.eup %2455  ;;  %v1345_v29 = vmul.f32 0.7978846, %v1313_v4  ;;  %v1471_v34 = vmul.f32 %v3135_v13, %v3420_v25  ;;  %v1315_v63 = vadd.f32 %v1283_v16, %v3236_v35  ;;  %v1284_v53 = vmul.f32 %v1252_v40, %v3265_v32 }
 0x137   :  { %v1403_v33 = vadd.f32 1.0, %v2456_v55  ;;  %2465 = vtanh.f32 %v1344_v6  ;;  %v2458_v17 = vpop.eup %2457  ;;  %v1346_v45 = vmul.f32 0.7978846, %v1314_v44  ;;  %v1253_v41 = vmul.f32 %v3343_v38, %v3257_v48 }
 0x138   :  { %2467 = vtanh.f32 %v1345_v29  ;;  %v3435_v42 = vmul.f32 0.044715, %v3358_v10  ;;  %1513 = vadd.xlane.f32.xlu1 %v1471_v34  ;;  %v1404_v57 = vadd.f32 1.0, %v2458_v17  ;;  %v1347_v46 = vmul.f32 0.7978846, %v1315_v63 }
 0x139   :  { %v3437_v5 = vmul.f32 %v1403_v33, %v1179_v62  ;;  %2469 = vtanh.f32 %v1346_v45  ;;  %v1316_v31 = vadd.f32 %v1284_v53, %v3265_v32  ;;  %v1285_v50 = vmul.f32 %v1253_v41, %v3257_v48 }
 0x13a   :  { %v1254_v52 = vmul.f32 %v3368_v1, %v3288_v51  ;;  %v3445_v38 = vmul.f32 %v1404_v57, %v1180_v49  ;;  %v1183_v47 = vmul.f32 0.5, %v3198_v2  ;;  %2471 = vtanh.f32 %v1347_v46 }
 0x13b   :  { %v1472_v4 = vmul.f32 %v3135_v13, %v3437_v5  ;;  %v2460_v62 = vpop.eup %2459  ;;  %v1348_v6 = vmul.f32 0.7978846, %v1316_v31  ;;  %v1317_v16 = vadd.f32 %v1285_v50, %v3257_v48  ;;  %v1255_v55 = vmul.f32 %v3355_v28, %v3278_v15 }
 0x13c   :  { %v1286_v40 = vmul.f32 %v1254_v52, %v3288_v51  ;;  %v3453_v1 = vmul.f32 0.044715, %v3372_v59  ;;  %v1473_v49 = vmul.f32 %v3135_v13, %v3445_v38  ;;  %v1405_v29 = vadd.f32 1.0, %v2460_v62 }
 0x13d   :  { %1515 = vadd.xlane.f32.xlu0 %v1472_v4  ;;  %v1256_v2 = vmul.f32 %v1224_v36, %v3316_v11  ;;  %2473 = vtanh.f32 %v1348_v6  ;;  %v1349_v44 = vmul.f32 0.7978846, %v1317_v16  ;;  %v1287_v33 = vmul.f32 %v1255_v55, %v3278_v15 }
 0x13e   :  { %v1318_v34 = vadd.f32 %v1286_v40, %v3288_v51  ;;  %1517 = vadd.xlane.f32.xlu1 %v1473_v49  ;;  %v3461_v63 = vmul.f32 %v1405_v29, %v3394_v12  ;;  %v1184_v28 = vmul.f32 0.5, %v3275_v14  ;;  %v1257_v45 = vmul.f32 %v3378_v39, %v3301_v27 }
 0x13f   :  { %v1288_v17 = vmul.f32 %v1256_v2, %v3316_v11  ;;  %v2462_v53 = vpop.eup %2461  ;;  %v1230_v36 = vmul.f32 0.044715, %v3381_v43  ;;  %2475 = vtanh.f32 %v1349_v44  ;;  %v1319_v57 = vadd.f32 %v1287_v33, %v3278_v15 }
 0x140   :  { %v1350_v41 = vmul.f32 0.7978846, %v1318_v34  ;;  %v1474_v46 = vmul.f32 %v3135_v13, %v3461_v63  ;;  %v1406_v31 = vadd.f32 1.0, %v2462_v53  ;;  %v1289_v14 = vmul.f32 %v1257_v45, %v3301_v27 }
 0x141   :  { %v1320_v12 = vadd.f32 %v1288_v17, %v3316_v11  ;;  %v1185_v50 = vmul.f32 0.5, %v3247_v58  ;;  %v1351_v52 = vmul.f32 0.7978846, %v1319_v57  ;;  %v1258_v39 = vmul.f32 %v3415_v7, %v3339_v0 }
 0x142   :  { %2477 = vtanh.f32 %v1350_v41  ;;  %v2464_v4 = vpop.eup %2463  ;;  %1519 = vadd.xlane.f32.xlu0 %v1474_v46  ;;  %v3477_v62 = vmul.f32 %v1406_v31, %v3406_v22  ;;  %v1321_v16 = vadd.f32 %v1289_v14, %v3301_v27  ;;  %v1259_v40 = vmul.f32 %v3400_v54, %v3326_v30 }
 0x143   :  { %v1352_v6 = vmul.f32 0.7978846, %v1320_v12  ;;  %v1407_v49 = vadd.f32 1.0, %v2464_v4  ;;  %v1186_v58 = vmul.f32 0.5, %v3313_v19  ;;  %2479 = vtanh.f32 %v1351_v52 }
 0x144   :  { %v2466_v55 = vpop.eup %2465  ;;  %v1290_v29 = vmul.f32 %v1258_v39, %v3339_v0  ;;  %v1475_v7 = vmul.f32 %v3135_v13, %v3477_v62  ;;  %v1353_v22 = vmul.f32 0.7978846, %v1321_v16  ;;  %v1291_v54 = vmul.f32 %v1259_v40, %v3326_v30 }
 0x145   :  { %v2468_v2 = vpop.eup %2467  ;;  %v1408_v44 = vadd.f32 1.0, %v2466_v55  ;;  %2481 = vtanh.f32 %v1352_v6  ;;  %v3486_v34 = vmul.f32 %v1407_v49, %v1183_v47  ;;  %v1187_v53 = vmul.f32 0.5, %v3236_v35 }
 0x146   :  { %v1409_v33 = vadd.f32 1.0, %v2468_v2  ;;  %v1322_v17 = vadd.f32 %v1290_v29, %v3339_v0  ;;  %v2470_v45 = vpop.eup %2469  ;;  %1521 = vadd.xlane.f32.xlu1 %v1475_v7  ;;  %2483 = vtanh.f32 %v1353_v22  ;;  %v1260_v41 = vmul.f32 %v3435_v42, %v3358_v10 }
 0x147   :  { %v3490_v19 = vmul.f32 %v1408_v44, %v1184_v28  ;;  %v2472_v57 = vpop.eup %2471  ;;  %v1476_v47 = vmul.f32 %v3135_v13, %v3486_v34  ;;  %v1410_v31 = vadd.f32 1.0, %v2470_v45  ;;  %v1323_v28 = vadd.f32 %v1291_v54, %v3326_v30 }
 0x148   :  { %v3497_v46 = vmul.f32 %v1409_v33, %v1185_v50  ;;  %v1354_v12 = vmul.f32 0.7978846, %v1322_v17  ;;  %v1411_v52 = vadd.f32 1.0, %v2472_v57  ;;  %v1292_v35 = vmul.f32 %v1260_v41, %v3358_v10 }
 0x149   :  { %v1477_v14 = vmul.f32 %v3135_v13, %v3490_v19  ;;  %1523 = vadd.xlane.f32.xlu0 %v1476_v47  ;;  %v3503_v39 = vmul.f32 %v1410_v31, %v1186_v58  ;;  %v1188_v42 = vmul.f32 0.5, %v3265_v32  ;;  %v1263_v50 = vmul.f32 %v3453_v1, %v3372_v59 }
 0x14a   :  { %2485 = vtanh.f32 %v1354_v12  ;;  %v2474_v4 = vpop.eup %2473  ;;  %v1478_v6 = vmul.f32 %v3135_v13, %v3497_v46  ;;  %v3510_v16 = vmul.f32 %v1411_v52, %v1187_v53  ;;  %v1355_v40 = vmul.f32 0.7978846, %v1323_v28 }
 0x14b   :  { %1525 = vadd.xlane.f32.xlu1 %v1477_v14  ;;  %v1324_v55 = vadd.f32 %v1292_v35, %v3358_v10  ;;  %v1479_v49 = vmul.f32 %v3135_v13, %v3503_v39  ;;  %v1412_v58 = vadd.f32 1.0, %v2474_v4  ;;  %v1295_v32 = vmul.f32 %v1263_v50, %v3372_v59 }
 0x14c   :  { %v1262_v29 = vmul.f32 %v1230_v36, %v3381_v43  ;;  %v2476_v2 = vpop.eup %2475  ;;  %v1189_v1 = vmul.f32 0.5, %v3257_v48  ;;  %2487 = vtanh.f32 %v1355_v40  ;;  %v1480_v45 = vmul.f32 %v3135_v13, %v3510_v16 }
 0x14d   :  { %v1356_v7 = vmul.f32 0.7978846, %v1324_v55  ;;  %1527 = vadd.xlane.f32.xlu0 %v1478_v6  ;;  %v3518_v44 = vmul.f32 %v1412_v58, %v1188_v42  ;;  %v1413_v22 = vadd.f32 1.0, %v2476_v2  ;;  %v1327_v33 = vadd.f32 %v1295_v32, %v3372_v59 }
 0x14e   :  { %v1294_v17 = vmul.f32 %v1262_v29, %v3381_v43  ;;  %v1190_v36 = vmul.f32 0.5, %v3288_v51  ;;  %v1261_v48 = vmul.f32 %v3425_v20, %v3350_v61  ;;  %v1191_v51 = vmul.f32 0.5, %v3278_v15 }
 0x14f   :  { %v2478_v54 = vpop.eup %2477  ;;  %1529 = vadd.xlane.f32.xlu1 %v1479_v49  ;;  %2489 = vtanh.f32 %v1356_v7  ;;  %v1481_v53 = vmul.f32 %v3135_v13, %v3518_v44  ;;  %v3529_v41 = vmul.f32 %v1413_v22, %v1189_v1  ;;  %v1359_v47 = vmul.f32 0.7978846, %v1327_v33 }
 0x150   :  { %v1414_v57 = vadd.f32 1.0, %v2478_v54  ;;  %v2480_v31 = vpop.eup %2479  ;;  %v1326_v12 = vadd.f32 %v1294_v17, %v3381_v43  ;;  %v1293_v14 = vmul.f32 %v1261_v48, %v3350_v61  ;;  %v1192_v20 = vmul.f32 0.5, %v3316_v11 }
 0x151   :  { %1531 = vadd.xlane.f32.xlu0 %v1480_v45  ;;  %v1415_v35 = vadd.f32 1.0, %v2480_v31  ;;  %2491 = vtanh.f32 %v1359_v47  ;;  %v1482_v40 = vmul.f32 %v3135_v13, %v3529_v41  ;;  %v1193_v11 = vmul.f32 0.5, %v3301_v27 }
 0x152   :  { %v2482_v52 = vpop.eup %2481  ;;  %v3533_v28 = vmul.f32 %v1414_v57, %v1190_v36  ;;  %v1358_v50 = vmul.f32 0.7978846, %v1326_v12  ;;  %v1325_v4 = vadd.f32 %v1293_v14, %v3350_v61  ;;  %v1194_v22 = vmul.f32 0.5, %v3339_v0 }
 0x153   :  { %1533 = vadd.xlane.f32.xlu1 %v1481_v53  ;;  %v1416_v42 = vadd.f32 1.0, %v2482_v52  ;;  %v2484_v6 = vpop.eup %2483  ;;  %v3542_v49 = vmul.f32 %v1415_v35, %v1191_v51  ;;  %v1195_v27 = vmul.f32 0.5, %v3326_v30  ;;  %v1196_v0 = vmul.f32 0.5, %v3358_v10 }
 0x154   :  { %v1483_v55 = vmul.f32 %v3135_v13, %v3533_v28  ;;  %v1417_v15 = vadd.f32 1.0, %v2484_v6  ;;  %2493 = vtanh.f32 %v1358_v50  ;;  %v1357_v32 = vmul.f32 0.7978846, %v1325_v4 }
 0x155   :  { %v3544_v58 = vmul.f32 %v1416_v42, %v1192_v20  ;;  %1535 = vadd.xlane.f32.xlu0 %v1482_v40  ;;  %v1484_v1 = vmul.f32 %v3135_v13, %v3542_v49  ;;  %v1199_v14 = vmul.f32 0.5, %v3372_v59  ;;  %v1198_v10 = vmul.f32 0.5, %v3381_v43 }
 0x156   :  { %2495 = vtanh.f32 %v1357_v32  ;;  %v3551_v7 = vmul.f32 %v1417_v15, %v1193_v11  ;;  %v1197_v59 = vmul.f32 0.5, %v3350_v61 }
 0x157   :  { %v2486_v29 = vpop.eup %2485  ;;  %1537 = vadd.xlane.f32.xlu1 %v1483_v55  ;;  %v1485_v2 = vmul.f32 %v3135_v13, %v3544_v58 }
 0x158   :  { %v1418_v33 = vadd.f32 1.0, %v2486_v29  ;;  %v1486_v48 = vmul.f32 %v3135_v13, %v3551_v7 }
 0x159   :  { %v2488_v17 = vpop.eup %2487  ;;  %1539 = vadd.xlane.f32.xlu0 %v1484_v1 }
 0x15a   :  { %v3554_v54 = vmul.f32 %v1418_v33, %v1194_v22  ;;  %v1419_v45 = vadd.f32 1.0, %v2488_v17 }
 0x15b   :  { %1541 = vadd.xlane.f32.xlu1 %v1485_v2 }
 0x15c   :  { %v2490_v36 = vpop.eup %2489  ;;  %v1487_v53 = vmul.f32 %v3135_v13, %v3554_v54  ;;  %v3561_v57 = vmul.f32 %v1419_v45, %v1195_v27 }
 0x15d   :  { %v1420_v47 = vadd.f32 1.0, %v2490_v36  ;;  %1543 = vadd.xlane.f32.xlu0 %v1486_v48 }
 0x15e   :  { %v2492_v31 = vpop.eup %2491  ;;  %v1488_v30 = vmul.f32 %v3135_v13, %v3561_v57 }
 0x15f   :  { %1545 = vadd.xlane.f32.xlu1 %v1487_v53  ;;  %v3564_v12 = vmul.f32 %v1420_v47, %v1196_v0  ;;  %v1423_v52 = vadd.f32 1.0, %v2492_v31 }
 0x161   :  { %v1489_v51 = vmul.f32 %v3135_v13, %v3564_v12  ;;  %v2494_v35 = vpop.eup %2493  ;;  %1547 = vadd.xlane.f32.xlu0 %v1488_v30  ;;  %v3571_v20 = vmul.f32 %v1423_v52, %v1199_v14 }
 0x162   :  { %v1422_v42 = vadd.f32 1.0, %v2494_v35 }
 0x163   :  { %1549 = vadd.xlane.f32.xlu1 %v1489_v51  ;;  %v2496_v50 = vpop.eup %2495  ;;  %v1492_v4 = vmul.f32 %v3135_v13, %v3571_v20 }
 0x164   :  { %v3576_v6 = vmul.f32 %v1422_v42, %v1198_v10  ;;  %v1421_v40 = vadd.f32 1.0, %v2496_v50 }
 0x165   :  { %1555 = vadd.xlane.f32.xlu0 %v1492_v4 }
 0x166   :  { %v1491_v55 = vmul.f32 %v3135_v13, %v3576_v6  ;;  %v3581_v15 = vmul.f32 %v1421_v40, %v1197_v59 }
 0x168   :  { %1553 = vadd.xlane.f32.xlu1 %v1491_v55  ;;  %v1490_v43 = vmul.f32 %v3135_v13, %v3581_v15 }
 0x16a   :  { %1551 = vadd.xlane.f32.xlu0 %v1490_v43 }
 0x19a   :  { %v1496_v32 = vpop.xlane.xlu1 %1495 }
 0x19b   :  { %v1558_v11 = vmul.f32 0.03125, %v1496_v32 }
 0x19c   :  { %v1494_v29 = vpop.xlane.xlu0 %1493 }
 0x19d   :  { %v1590_v2 = vsub.f32 %v3180_v56, %v1558_v11  ;;  %v1557_v1 = vmul.f32 0.03125, %v1494_v29 }
 0x19f   :  { %v1589_v61 = vsub.f32 %v3195_v9, %v1557_v1  ;;  %v3588_v22 = vmul.f32 %v3135_v13, %v1590_v2  ;;  %v1498_v33 = vpop.xlane.xlu1 %1497 }
 0x1a0   :  { %v1500_v17 = vpop.xlane.xlu0 %1499  ;;  %v1559_v27 = vmul.f32 0.03125, %v1498_v33 }
 0x1a1   :  { %v1560_v45 = vmul.f32 0.03125, %v1500_v17  ;;  %v1654_v36 = vmul.f32 %v3588_v22, %v3588_v22  ;;  %v3593_v48 = vmul.f32 %v3135_v13, %v1589_v61 }
 0x1a2   :  { %v1591_v53 = vsub.f32 %v3226_v24, %v1559_v27 }
 0x1a3   :  { %v1592_v56 = vsub.f32 %v3213_v26, %v1560_v45  ;;  %1687 = vadd.xlane.f32.xlu0 %v1654_v36  ;;  %v1653_v9 = vmul.f32 %v3593_v48, %v3593_v48 }
 0x1a4   :  { %v3600_v0 = vmul.f32 %v3135_v13, %v1591_v53 }
 0x1a5   :  { %1685 = vadd.xlane.f32.xlu1 %v1653_v9  ;;  %v3603_v47 = vmul.f32 %v3135_v13, %v1592_v56  ;;  %v1502_v31 = vpop.xlane.xlu1 %1501 }
 0x1a6   :  { %v1561_v30 = vmul.f32 0.03125, %v1502_v31  ;;  %v1655_v14 = vmul.f32 %v3600_v0, %v3600_v0 }
 0x1a7   :  { %v1656_v24 = vmul.f32 %v3603_v47, %v3603_v47 }
 0x1a8   :  { %v1504_v26 = vpop.xlane.xlu0 %1503  ;;  %v1593_v52 = vsub.f32 %v3261_v21, %v1561_v30 }
 0x1a9   :  { %v1562_v51 = vmul.f32 0.03125, %v1504_v26  ;;  %1689 = vadd.xlane.f32.xlu1 %v1655_v14  ;;  %1691 = vadd.xlane.f32.xlu0 %v1656_v24 }
 0x1aa   :  { %v1506_v35 = vpop.xlane.xlu1 %1505  ;;  %v3612_v50 = vmul.f32 %v3135_v13, %v1593_v52 }
 0x1ab   :  { %v1594_v10 = vsub.f32 %v3272_v18, %v1562_v51  ;;  %v1563_v42 = vmul.f32 0.03125, %v1506_v35 }
 0x1ac   :  { %v1508_v4 = vpop.xlane.xlu0 %1507  ;;  %v1657_v55 = vmul.f32 %v3612_v50, %v3612_v50 }
 0x1ad   :  { %v1595_v59 = vsub.f32 %v3284_v37, %v1563_v42  ;;  %v1564_v40 = vmul.f32 0.03125, %v1508_v4  ;;  %v3618_v43 = vmul.f32 %v3135_v13, %v1594_v10 }
 0x1ae   :  { %1693 = vadd.xlane.f32.xlu1 %v1657_v55 }
 0x1af   :  { %v1596_v21 = vsub.f32 %v3294_v8, %v1564_v40  ;;  %v1658_v18 = vmul.f32 %v3618_v43, %v3618_v43  ;;  %v3624_v32 = vmul.f32 %v3135_v13, %v1595_v59 }
 0x1b1   :  { %1695 = vadd.xlane.f32.xlu0 %v1658_v18  ;;  %v1659_v37 = vmul.f32 %v3624_v32, %v3624_v32  ;;  %v3629_v11 = vmul.f32 %v3135_v13, %v1596_v21 }
 0x1b3   :  { %1697 = vadd.xlane.f32.xlu1 %v1659_v37  ;;  %v1660_v29 = vmul.f32 %v3629_v11, %v3629_v11 }
 0x1b5   :  { %1699 = vadd.xlane.f32.xlu0 %v1660_v29 }
 0x1b8   :  { %v1510_v8 = vpop.xlane.xlu1 %1509 }
 0x1b9   :  { %v1565_v2 = vmul.f32 0.03125, %v1510_v8 }
 0x1bb   :  { %v1597_v1 = vsub.f32 %v3362_v60, %v1565_v2  ;;  %v1512_v61 = vpop.xlane.xlu0 %1511 }
 0x1bc   :  { %v1566_v33 = vmul.f32 0.03125, %v1512_v61 }
 0x1bd   :  { %v3635_v17 = vmul.f32 %v3135_v13, %v1597_v1 }
 0x1be   :  { %v1598_v27 = vsub.f32 %v3387_v3, %v1566_v33 }
 0x1bf   :  { %v1661_v45 = vmul.f32 %v3635_v17, %v3635_v17 }
 0x1c0   :  { %v3641_v36 = vmul.f32 %v3135_v13, %v1598_v27 }
 0x1c1   :  { %1701 = vadd.xlane.f32.xlu1 %v1661_v45  ;;  %v1514_v53 = vpop.xlane.xlu1 %1513 }
 0x1c2   :  { %v1567_v56 = vmul.f32 0.03125, %v1514_v53  ;;  %v1662_v9 = vmul.f32 %v3641_v36, %v3641_v36 }
 0x1c4   :  { %v1599_v60 = vsub.f32 %v3420_v25, %v1567_v56  ;;  %1703 = vadd.xlane.f32.xlu0 %v1662_v9 }
 0x1c6   :  { %v1516_v31 = vpop.xlane.xlu0 %1515  ;;  %v3647_v14 = vmul.f32 %v3135_v13, %v1599_v60 }
 0x1c7   :  { %v1568_v30 = vmul.f32 0.03125, %v1516_v31  ;;  %v1518_v3 = vpop.xlane.xlu1 %1517 }
 0x1c8   :  { %v1569_v26 = vmul.f32 0.03125, %v1518_v3  ;;  %v1663_v52 = vmul.f32 %v3647_v14, %v3647_v14 }
 0x1c9   :  { %v1600_v24 = vsub.f32 %v3437_v5, %v1568_v30 }
 0x1ca   :  { %v1601_v51 = vsub.f32 %v3445_v38, %v1569_v26  ;;  %1705 = vadd.xlane.f32.xlu1 %v1663_v52 }
 0x1cb   :  { %v3654_v35 = vmul.f32 %v3135_v13, %v1600_v24  ;;  %v1520_v25 = vpop.xlane.xlu0 %1519 }
 0x1cc   :  { %v1570_v10 = vmul.f32 0.03125, %v1520_v25  ;;  %v3659_v4 = vmul.f32 %v3135_v13, %v1601_v51 }
 0x1cd   :  { %v1664_v42 = vmul.f32 %v3654_v35, %v3654_v35 }
 0x1ce   :  { %v1602_v5 = vsub.f32 %v3461_v63, %v1570_v10  ;;  %v1665_v59 = vmul.f32 %v3659_v4, %v3659_v4 }
 0x1cf   :  { %1707 = vadd.xlane.f32.xlu0 %v1664_v42  ;;  %v1522_v40 = vpop.xlane.xlu1 %1521 }
 0x1d0   :  { %v1571_v38 = vmul.f32 0.03125, %v1522_v40  ;;  %1709 = vadd.xlane.f32.xlu1 %v1665_v59  ;;  %v3665_v55 = vmul.f32 %v3135_v13, %v1602_v5 }
 0x1d2   :  { %v1603_v21 = vsub.f32 %v3477_v62, %v1571_v38  ;;  %v1524_v18 = vpop.xlane.xlu0 %1523  ;;  %v1666_v37 = vmul.f32 %v3665_v55, %v3665_v55 }
 0x1d3   :  { %v1572_v29 = vmul.f32 0.03125, %v1524_v18 }
 0x1d4   :  { %v1526_v8 = vpop.xlane.xlu1 %1525  ;;  %1711 = vadd.xlane.f32.xlu0 %v1666_v37  ;;  %v3671_v63 = vmul.f32 %v3135_v13, %v1603_v21 }
 0x1d5   :  { %v1573_v2 = vmul.f32 0.03125, %v1526_v8  ;;  %v1604_v1 = vsub.f32 %v3486_v34, %v1572_v29 }
 0x1d6   :  { %v1528_v33 = vpop.xlane.xlu0 %1527  ;;  %v1667_v27 = vmul.f32 %v3671_v63, %v3671_v63 }
 0x1d7   :  { %v1605_v61 = vsub.f32 %v3490_v19, %v1573_v2  ;;  %v1574_v62 = vmul.f32 0.03125, %v1528_v33  ;;  %v3678_v53 = vmul.f32 %v3135_v13, %v1604_v1 }
 0x1d8   :  { %v1530_v45 = vpop.xlane.xlu1 %1529  ;;  %1713 = vadd.xlane.f32.xlu1 %v1667_v27 }
 0x1d9   :  { %v1575_v56 = vmul.f32 0.03125, %v1530_v45  ;;  %v3681_v9 = vmul.f32 %v3135_v13, %v1605_v61  ;;  %v1606_v60 = vsub.f32 %v3497_v46, %v1574_v62  ;;  %v1668_v34 = vmul.f32 %v3678_v53, %v3678_v53 }
 0x1da   :  { %v1532_v31 = vpop.xlane.xlu0 %1531 }
 0x1db   :  { %v1607_v19 = vsub.f32 %v3503_v39, %v1575_v56  ;;  %v1669_v30 = vmul.f32 %v3681_v9, %v3681_v9  ;;  %v1576_v3 = vmul.f32 0.03125, %v1532_v31  ;;  %1715 = vadd.xlane.f32.xlu0 %v1668_v34  ;;  %v3690_v26 = vmul.f32 %v3135_v13, %v1606_v60 }
 0x1dc   :  { %v1534_v24 = vpop.xlane.xlu1 %1533 }
 0x1dd   :  { %v1577_v52 = vmul.f32 0.03125, %v1534_v24  ;;  %1717 = vadd.xlane.f32.xlu1 %v1669_v30  ;;  %v3693_v51 = vmul.f32 %v3135_v13, %v1607_v19  ;;  %v1608_v46 = vsub.f32 %v3510_v16, %v1576_v3  ;;  %v1670_v39 = vmul.f32 %v3690_v26, %v3690_v26 }
 0x1de   :  { %v1536_v10 = vpop.xlane.xlu0 %1535 }
 0x1df   :  { %v1609_v25 = vsub.f32 %v3518_v44, %v1577_v52  ;;  %v1671_v42 = vmul.f32 %v3693_v51, %v3693_v51  ;;  %v1578_v5 = vmul.f32 0.03125, %v1536_v10  ;;  %1719 = vadd.xlane.f32.xlu0 %v1670_v39  ;;  %v3702_v40 = vmul.f32 %v3135_v13, %v1608_v46 }
 0x1e0   :  { %v1538_v59 = vpop.xlane.xlu1 %1537 }
 0x1e1   :  { %v1579_v38 = vmul.f32 0.03125, %v1538_v59  ;;  %1721 = vadd.xlane.f32.xlu1 %v1671_v42  ;;  %v3705_v21 = vmul.f32 %v3135_v13, %v1609_v25  ;;  %v1610_v16 = vsub.f32 %v3529_v41, %v1578_v5  ;;  %v1672_v44 = vmul.f32 %v3702_v40, %v3702_v40 }
 0x1e2   :  { %v1540_v37 = vpop.xlane.xlu0 %1539 }
 0x1e3   :  { %v1611_v18 = vsub.f32 %v3533_v28, %v1579_v38  ;;  %v1673_v29 = vmul.f32 %v3705_v21, %v3705_v21  ;;  %v1580_v8 = vmul.f32 0.03125, %v1540_v37  ;;  %1723 = vadd.xlane.f32.xlu0 %v1672_v44  ;;  %v3714_v1 = vmul.f32 %v3135_v13, %v1610_v16 }
 0x1e4   :  { %v1542_v2 = vpop.xlane.xlu1 %1541 }
 0x1e5   :  { %v1581_v61 = vmul.f32 0.03125, %v1542_v2  ;;  %1725 = vadd.xlane.f32.xlu1 %v1673_v29  ;;  %v3717_v33 = vmul.f32 %v3135_v13, %v1611_v18  ;;  %v1612_v41 = vsub.f32 %v3542_v49, %v1580_v8  ;;  %v1674_v28 = vmul.f32 %v3714_v1, %v3714_v1 }
 0x1e6   :  { %v1544_v62 = vpop.xlane.xlu0 %1543 }
 0x1e7   :  { %v1613_v27 = vsub.f32 %v3544_v58, %v1581_v61  ;;  %v1675_v45 = vmul.f32 %v3717_v33, %v3717_v33  ;;  %v1582_v56 = vmul.f32 0.03125, %v1544_v62  ;;  %1727 = vadd.xlane.f32.xlu0 %v1674_v28  ;;  %v3726_v34 = vmul.f32 %v3135_v13, %v1612_v41 }
 0x1e8   :  { %v1546_v60 = vpop.xlane.xlu1 %1545 }
 0x1e9   :  { %v1583_v19 = vmul.f32 0.03125, %v1546_v60  ;;  %1729 = vadd.xlane.f32.xlu1 %v1675_v45  ;;  %v3729_v31 = vmul.f32 %v3135_v13, %v1613_v27  ;;  %v1614_v49 = vsub.f32 %v3551_v7, %v1582_v56  ;;  %v1676_v58 = vmul.f32 %v3726_v34, %v3726_v34 }
 0x1ea   :  { %v1548_v3 = vpop.xlane.xlu0 %1547 }
 0x1eb   :  { %v1615_v30 = vsub.f32 %v3554_v54, %v1583_v19  ;;  %v1677_v24 = vmul.f32 %v3729_v31, %v3729_v31  ;;  %v1584_v52 = vmul.f32 0.03125, %v1548_v3  ;;  %1731 = vadd.xlane.f32.xlu0 %v1676_v58  ;;  %v3738_v39 = vmul.f32 %v3135_v13, %v1614_v49 }
 0x1ec   :  { %v1550_v46 = vpop.xlane.xlu1 %1549 }
 0x1ed   :  { %v1585_v25 = vmul.f32 0.03125, %v1550_v46  ;;  %1733 = vadd.xlane.f32.xlu1 %v1677_v24  ;;  %v3741_v10 = vmul.f32 %v3135_v13, %v1615_v30  ;;  %v1616_v7 = vsub.f32 %v3561_v57, %v1584_v52  ;;  %v1678_v54 = vmul.f32 %v3738_v39, %v3738_v39 }
 0x1ee   :  { %v1556_v5 = vpop.xlane.xlu0 %1555 }
 0x1ef   :  { %v1617_v42 = vsub.f32 %v3564_v12, %v1585_v25  ;;  %v1679_v59 = vmul.f32 %v3741_v10, %v3741_v10  ;;  %1735 = vadd.xlane.f32.xlu0 %v1678_v54  ;;  %v1588_v38 = vmul.f32 0.03125, %v1556_v5  ;;  %v3750_v16 = vmul.f32 %v3135_v13, %v1616_v7 }
 0x1f1   :  { %1737 = vadd.xlane.f32.xlu1 %v1679_v59  ;;  %v3753_v44 = vmul.f32 %v3135_v13, %v1617_v42  ;;  %v1620_v57 = vsub.f32 %v3571_v20, %v1588_v38  ;;  %v1554_v18 = vpop.xlane.xlu1 %1553  ;;  %v1680_v37 = vmul.f32 %v3750_v16, %v3750_v16 }
 0x1f2   :  { %v1587_v12 = vmul.f32 0.03125, %v1554_v18 }
 0x1f3   :  { %v1681_v29 = vmul.f32 %v3753_v44, %v3753_v44  ;;  %1739 = vadd.xlane.f32.xlu0 %v1680_v37  ;;  %v1552_v8 = vpop.xlane.xlu0 %1551  ;;  %v3761_v2 = vmul.f32 %v3135_v13, %v1620_v57 }
 0x1f4   :  { %v1619_v61 = vsub.f32 %v3576_v6, %v1587_v12  ;;  %v1586_v41 = vmul.f32 0.03125, %v1552_v8 }
 0x1f5   :  { %1741 = vadd.xlane.f32.xlu1 %v1681_v29  ;;  %v1684_v20 = vmul.f32 %v3761_v2, %v3761_v2 }
 0x1f6   :  { %v1618_v28 = vsub.f32 %v3581_v15, %v1586_v41  ;;  %v3768_v27 = vmul.f32 %v3135_v13, %v1619_v61 }
 0x1f7   :  { %1747 = vadd.xlane.f32.xlu0 %v1684_v20 }
 0x1f8   :  { %v1683_v62 = vmul.f32 %v3768_v27, %v3768_v27  ;;  %v3773_v45 = vmul.f32 %v3135_v13, %v1618_v28 }
 0x1fa   :  { %1745 = vadd.xlane.f32.xlu1 %v1683_v62  ;;  %v1682_v6 = vmul.f32 %v3773_v45, %v3773_v45 }
 0x1fc   :  { %1743 = vadd.xlane.f32.xlu0 %v1682_v6 }
 0x22c   :  { %v1688_v56 = vpop.xlane.xlu0 %1687 }
 0x22d   :  { %v1750_v60 = vmul.f32 0.03125, %v1688_v56 }
 0x22e   :  { %v1686_v19 = vpop.xlane.xlu1 %1685 }
 0x22f   :  { %v1782_v49 = vadd.f32 1e-05, %v1750_v60  ;;  %v1749_v15 = vmul.f32 0.03125, %v1686_v19 }
 0x231   :  { %2497 = vrsqrt.f32 %v1782_v49  ;;  %v1781_v58 = vadd.f32 1e-05, %v1749_v15 }
 0x232   :  { %v1690_v30 = vpop.xlane.xlu1 %1689  ;;  %v1692_v3 = vpop.xlane.xlu0 %1691 }
 0x233   :  { %2499 = vrsqrt.f32 %v1781_v58  ;;  %v1751_v24 = vmul.f32 0.03125, %v1690_v30  ;;  %v1752_v52 = vmul.f32 0.03125, %v1692_v3 }
 0x235   :  { %v1783_v46 = vadd.f32 1e-05, %v1751_v24  ;;  %v1784_v13 = vadd.f32 1e-05, %v1752_v52 }
 0x237   :  { %2501 = vrsqrt.f32 %v1783_v46  ;;  %v1694_v25 = vpop.xlane.xlu1 %1693 }
 0x238   :  { %2503 = vrsqrt.f32 %v1784_v13  ;;  %v1753_v7 = vmul.f32 0.03125, %v1694_v25 }
 0x23a   :  { %v1696_v54 = vpop.xlane.xlu0 %1695  ;;  %v1785_v42 = vadd.f32 1e-05, %v1753_v7 }
 0x23b   :  { %v1754_v5 = vmul.f32 0.03125, %v1696_v54 }
 0x23c   :  { %v1698_v59 = vpop.xlane.xlu1 %1697  ;;  %2505 = vrsqrt.f32 %v1785_v42 }
 0x23d   :  { %v1786_v38 = vadd.f32 1e-05, %v1754_v5  ;;  %v1755_v57 = vmul.f32 0.03125, %v1698_v59 }
 0x23e   :  { %v2498_v18 = vpop.eup %2497  ;;  %v1700_v37 = vpop.xlane.xlu0 %1699 }
 0x23f   :  { %v1846_v12 = vmul.f32 %v2498_v18, %v3588_v22  ;;  %2507 = vrsqrt.f32 %v1786_v38  ;;  %v1787_v29 = vadd.f32 1e-05, %v1755_v57  ;;  %v1756_v8 = vmul.f32 0.03125, %v1700_v37 }
 0x240   :  { %v2500_v61 = vpop.eup %2499 }
 0x241   :  { %2009 = vst [vmem:[#allocation2 + $0x8] sm:$0xff] %v1846_v12  ;;  %v1845_v41 = vmul.f32 %v2500_v61, %v3593_v48  ;;  %2509 = vrsqrt.f32 %v1787_v29  ;;  %v1788_v20 = vadd.f32 1e-05, %v1756_v8 }
 0x243   :  { %2008 = vst [vmem:[#allocation2] sm:$0xff] %v1845_v41  ;;  %2511 = vrsqrt.f32 %v1788_v20 }
 0x244   :  { %v2502_v28 = vpop.eup %2501 }
 0x245   :  { %v2504_v62 = vpop.eup %2503  ;;  %v1847_v6 = vmul.f32 %v2502_v28, %v3600_v0 }
 0x246   :  { %v1848_v56 = vmul.f32 %v2504_v62, %v3603_v47 }
 0x247   :  { %2010 = vst [vmem:[#allocation2 + $0x10] sm:$0xff] %v1847_v6 }
 0x248   :  { %2011 = vst [vmem:[#allocation2 + $0x18] sm:$0xff] %v1848_v56 }
 0x249   :  { %v2506_v22 = vpop.eup %2505 }
 0x24a   :  { %v1702_v60 = vpop.xlane.xlu1 %1701  ;;  %v1849_v19 = vmul.f32 %v2506_v22, %v3612_v50 }
 0x24b   :  { %v1757_v49 = vmul.f32 0.03125, %v1702_v60 }
 0x24c   :  { %v2508_v15 = vpop.eup %2507  ;;  %2012 = vst [vmem:[#allocation2 + $0x20] sm:$0xff] %v1849_v19 }
 0x24d   :  { %v1850_v48 = vmul.f32 %v2508_v15, %v3618_v43  ;;  %v1789_v58 = vadd.f32 1e-05, %v1757_v49  ;;  %v1704_v3 = vpop.xlane.xlu0 %1703 }
 0x24e   :  { %v2510_v30 = vpop.eup %2509  ;;  %v1758_v0 = vmul.f32 0.03125, %v1704_v3 }
 0x24f   :  { %2013 = vst [vmem:[#allocation2 + $0x28] sm:$0xff] %v1850_v48  ;;  %v1851_v24 = vmul.f32 %v2510_v30, %v3624_v32  ;;  %2513 = vrsqrt.f32 %v1789_v58 }
 0x250   :  { %v2512_v47 = vpop.eup %2511  ;;  %v1790_v46 = vadd.f32 1e-05, %v1758_v0 }
 0x251   :  { %2014 = vst [vmem:[#allocation2 + $0x30] sm:$0xff] %v1851_v24  ;;  %v1852_v52 = vmul.f32 %v2512_v47, %v3629_v11 }
 0x252   :  { %2515 = vrsqrt.f32 %v1790_v46 }
 0x253   :  { %2015 = vst [vmem:[#allocation2 + $0x38] sm:$0xff] %v1852_v52  ;;  %v1706_v50 = vpop.xlane.xlu1 %1705 }
 0x254   :  { %v1759_v13 = vmul.f32 0.03125, %v1706_v50 }
 0x256   :  { %v1791_v25 = vadd.f32 1e-05, %v1759_v13 }
 0x258   :  { %v1708_v7 = vpop.xlane.xlu0 %1707  ;;  %2517 = vrsqrt.f32 %v1791_v25 }
 0x259   :  { %v1760_v43 = vmul.f32 0.03125, %v1708_v7  ;;  %v1710_v54 = vpop.xlane.xlu1 %1709 }
 0x25a   :  { %v1761_v5 = vmul.f32 0.03125, %v1710_v54 }
 0x25b   :  { %v1792_v42 = vadd.f32 1e-05, %v1760_v43 }
 0x25c   :  { %v2514_v59 = vpop.eup %2513  ;;  %v1793_v38 = vadd.f32 1e-05, %v1761_v5 }
 0x25d   :  { %v1853_v32 = vmul.f32 %v2514_v59, %v3635_v17  ;;  %2519 = vrsqrt.f32 %v1792_v42  ;;  %v1712_v57 = vpop.xlane.xlu0 %1711 }
 0x25e   :  { %2521 = vrsqrt.f32 %v1793_v38  ;;  %v1762_v11 = vmul.f32 0.03125, %v1712_v57 }
 0x25f   :  { %2016 = vst [vmem:[#allocation2 + $0x40] sm:$0xff] %v1853_v32  ;;  %v2516_v18 = vpop.eup %2515 }
 0x260   :  { %v1854_v37 = vmul.f32 %v2516_v18, %v3641_v36  ;;  %v1794_v12 = vadd.f32 1e-05, %v1762_v11 }
 0x261   :  { %v1714_v29 = vpop.xlane.xlu1 %1713 }
 0x262   :  { %2017 = vst [vmem:[#allocation2 + $0x48] sm:$0xff] %v1854_v37  ;;  %2523 = vrsqrt.f32 %v1794_v12  ;;  %v1763_v8 = vmul.f32 0.03125, %v1714_v29 }
 0x264   :  { %v1795_v61 = vadd.f32 1e-05, %v1763_v8  ;;  %v1716_v41 = vpop.xlane.xlu0 %1715 }
 0x265   :  { %v2518_v20 = vpop.eup %2517  ;;  %v1764_v28 = vmul.f32 0.03125, %v1716_v41 }
 0x266   :  { %v1718_v62 = vpop.xlane.xlu1 %1717  ;;  %v1855_v17 = vmul.f32 %v2518_v20, %v3647_v14  ;;  %2525 = vrsqrt.f32 %v1795_v61 }
 0x267   :  { %v1765_v6 = vmul.f32 0.03125, %v1718_v62  ;;  %v1796_v56 = vadd.f32 1e-05, %v1764_v28 }
 0x268   :  { %2018 = vst [vmem:[#allocation2 + $0x50] sm:$0xff] %v1855_v17  ;;  %v1720_v60 = vpop.xlane.xlu0 %1719 }
 0x269   :  { %v1797_v22 = vadd.f32 1e-05, %v1765_v6  ;;  %2527 = vrsqrt.f32 %v1796_v56  ;;  %v1766_v36 = vmul.f32 0.03125, %v1720_v60 }
 0x26a   :  { %v2520_v19 = vpop.eup %2519  ;;  %v1722_v49 = vpop.xlane.xlu1 %1721 }
 0x26b   :  { %v1856_v15 = vmul.f32 %v2520_v19, %v3654_v35  ;;  %2529 = vrsqrt.f32 %v1797_v22  ;;  %v1767_v48 = vmul.f32 0.03125, %v1722_v49  ;;  %v2522_v58 = vpop.eup %2521  ;;  %v1798_v30 = vadd.f32 1e-05, %v1766_v36 }
 0x26c   :  { %v1857_v3 = vmul.f32 %v2522_v58, %v3659_v4  ;;  %v1724_v24 = vpop.xlane.xlu0 %1723 }
 0x26d   :  { %2019 = vst [vmem:[#allocation2 + $0x58] sm:$0xff] %v1856_v15  ;;  %v1799_v14 = vadd.f32 1e-05, %v1767_v48  ;;  %2531 = vrsqrt.f32 %v1798_v30  ;;  %v1768_v0 = vmul.f32 0.03125, %v1724_v24 }
 0x26e   :  { %v1726_v47 = vpop.xlane.xlu1 %1725  ;;  %2020 = vst [vmem:[#allocation2 + $0x60] sm:$0xff] %v1857_v3 }
 0x26f   :  { %2533 = vrsqrt.f32 %v1799_v14  ;;  %v1769_v52 = vmul.f32 0.03125, %v1726_v47  ;;  %v2524_v46 = vpop.eup %2523  ;;  %v1800_v50 = vadd.f32 1e-05, %v1768_v0 }
 0x270   :  { %v1858_v13 = vmul.f32 %v2524_v46, %v3665_v55  ;;  %v1728_v25 = vpop.xlane.xlu0 %1727 }
 0x271   :  { %v1801_v35 = vadd.f32 1e-05, %v1769_v52  ;;  %2535 = vrsqrt.f32 %v1800_v50  ;;  %v1770_v7 = vmul.f32 0.03125, %v1728_v25 }
 0x272   :  { %v1730_v43 = vpop.xlane.xlu1 %1729  ;;  %2021 = vst [vmem:[#allocation2 + $0x68] sm:$0xff] %v1858_v13 }
 0x273   :  { %2537 = vrsqrt.f32 %v1801_v35  ;;  %v1771_v4 = vmul.f32 0.03125, %v1730_v43  ;;  %v2526_v54 = vpop.eup %2525  ;;  %v1802_v42 = vadd.f32 1e-05, %v1770_v7 }
 0x274   :  { %v1859_v5 = vmul.f32 %v2526_v54, %v3671_v63  ;;  %v1732_v32 = vpop.xlane.xlu0 %1731 }
 0x275   :  { %v1803_v59 = vadd.f32 1e-05, %v1771_v4  ;;  %2539 = vrsqrt.f32 %v1802_v42  ;;  %v1772_v38 = vmul.f32 0.03125, %v1732_v32 }
 0x276   :  { %v1734_v57 = vpop.xlane.xlu1 %1733  ;;  %v2528_v11 = vpop.eup %2527  ;;  %2022 = vst [vmem:[#allocation2 + $0x70] sm:$0xff] %v1859_v5 }
 0x277   :  { %2541 = vrsqrt.f32 %v1803_v59  ;;  %v1773_v55 = vmul.f32 0.03125, %v1734_v57  ;;  %v1860_v37 = vmul.f32 %v2528_v11, %v3678_v53  ;;  %v1804_v12 = vadd.f32 1e-05, %v1772_v38 }
 0x278   :  { %v2530_v18 = vpop.eup %2529  ;;  %v1736_v61 = vpop.xlane.xlu0 %1735 }
 0x279   :  { %v1861_v29 = vmul.f32 %v2530_v18, %v3681_v9  ;;  %v1805_v8 = vadd.f32 1e-05, %v1773_v55  ;;  %2023 = vst [vmem:[#allocation2 + $0x78] sm:$0xff] %v1860_v37  ;;  %2543 = vrsqrt.f32 %v1804_v12  ;;  %v1774_v63 = vmul.f32 0.03125, %v1736_v61 }
 0x27a   :  { %v1738_v41 = vpop.xlane.xlu1 %1737  ;;  %v2532_v20 = vpop.eup %2531 }
 0x27b   :  { %2024 = vst [vmem:[#allocation2 + $0x80] sm:$0xff] %v1861_v29  ;;  %2545 = vrsqrt.f32 %v1805_v8  ;;  %v1775_v28 = vmul.f32 0.03125, %v1738_v41  ;;  %v1862_v17 = vmul.f32 %v2532_v20, %v3690_v26  ;;  %v1806_v6 = vadd.f32 1e-05, %v1774_v63 }
 0x27c   :  { %v2534_v62 = vpop.eup %2533  ;;  %v1740_v22 = vpop.xlane.xlu0 %1739 }
 0x27d   :  { %v1863_v56 = vmul.f32 %v2534_v62, %v3693_v51  ;;  %v1807_v53 = vadd.f32 1e-05, %v1775_v28  ;;  %2025 = vst [vmem:[#allocation2 + $0x88] sm:$0xff] %v1862_v17  ;;  %2547 = vrsqrt.f32 %v1806_v6  ;;  %v1776_v9 = vmul.f32 0.03125, %v1740_v22 }
 0x27e   :  { %v1742_v60 = vpop.xlane.xlu1 %1741  ;;  %v2536_v19 = vpop.eup %2535 }
 0x27f   :  { %2026 = vst [vmem:[#allocation2 + $0x90] sm:$0xff] %v1863_v56  ;;  %2549 = vrsqrt.f32 %v1807_v53  ;;  %v1777_v36 = vmul.f32 0.03125, %v1742_v60  ;;  %v1864_v15 = vmul.f32 %v2536_v19, %v3702_v40  ;;  %v1808_v48 = vadd.f32 1e-05, %v1776_v9 }
 0x280   :  { %v2538_v49 = vpop.eup %2537  ;;  %v1748_v30 = vpop.xlane.xlu0 %1747 }
 0x281   :  { %v1865_v58 = vmul.f32 %v2538_v49, %v3705_v21  ;;  %v1809_v26 = vadd.f32 1e-05, %v1777_v36  ;;  %2027 = vst [vmem:[#allocation2 + $0x98] sm:$0xff] %v1864_v15  ;;  %2551 = vrsqrt.f32 %v1808_v48  ;;  %v1780_v51 = vmul.f32 0.03125, %v1748_v30 }
 0x282   :  { %v2540_v3 = vpop.eup %2539 }
 0x283   :  { %2028 = vst [vmem:[#allocation2 + $0xa0] sm:$0xff] %v1865_v58  ;;  %2553 = vrsqrt.f32 %v1809_v26  ;;  %v1866_v24 = vmul.f32 %v2540_v3, %v3714_v1  ;;  %v1812_v0 = vadd.f32 1e-05, %v1780_v51  ;;  %v1746_v47 = vpop.xlane.xlu1 %1745 }
 0x284   :  { %v2542_v14 = vpop.eup %2541  ;;  %v1779_v46 = vmul.f32 0.03125, %v1746_v47 }
 0x285   :  { %v1867_v52 = vmul.f32 %v2542_v14, %v3717_v33  ;;  %2029 = vst [vmem:[#allocation2 + $0xa8] sm:$0xff] %v1866_v24  ;;  %2555 = vrsqrt.f32 %v1812_v0  ;;  %v1744_v40 = vpop.xlane.xlu0 %1743  ;;  %v1878_v33 = vshrl.u32 %v1456_v23, 7 }
 0x286   :  { %v2544_v21 = vpop.eup %2543  ;;  %v1811_v50 = vadd.f32 1e-05, %v1779_v46  ;;  %v1778_v13 = vmul.f32 0.03125, %v1744_v40 }
 0x287   :  { %2030 = vst [vmem:[#allocation2 + $0xb0] sm:$0xff] %v1867_v52  ;;  %v1868_v25 = vmul.f32 %v2544_v21, %v3726_v34  ;;  %v1909_v59 = vadd.s32 248, %v1878_v33 }
 0x288   :  { %v2546_v35 = vpop.eup %2545  ;;  %2557 = vrsqrt.f32 %v1811_v50  ;;  %v1810_v43 = vadd.f32 1e-05, %v1778_v13 }
 0x289   :  { %v1869_v7 = vmul.f32 %v2546_v35, %v3729_v31  ;;  %2031 = vst [vmem:[#allocation2 + $0xb8] sm:$0xff] %v1868_v25  ;;  %vm1975_vm3 = vcmp.lt.s32.totalorder %v1909_v59, 250 }
 0x28a   :  { %v2548_v1 = vpop.eup %2547  ;;  %2559 = vrsqrt.f32 %v1810_v43 }
 0x28b   :  { %2032 = vst [vmem:[#allocation2 + $0xc0] sm:$0xff] %v1869_v7  ;;  %v1870_v54 = vmul.f32 %v2548_v1, %v3738_v39 }
 0x28c   :  { %v2550_v4 = vpop.eup %2549 }
 0x28d   :  { %v1871_v42 = vmul.f32 %v2550_v4, %v3741_v10  ;;  %2033 = vst [vmem:[#allocation2 + $0xc8] sm:$0xff] %v1870_v54 }
 0x28e   :  { %v2552_v5 = vpop.eup %2551 }
 0x28f   :  { %2034 = vst [vmem:[#allocation2 + $0xd0] sm:$0xff] %v1871_v42  ;;  %v1872_v31 = vmul.f32 %v2552_v5, %v3750_v16 }
 0x290   :  { %v2554_v34 = vpop.eup %2553 }
 0x291   :  { %v1873_v32 = vmul.f32 %v2554_v34, %v3753_v44  ;;  %2035 = vst [vmem:[#allocation2 + $0xd8] sm:$0xff] %v1872_v31 }
 0x292   :  { %v2556_v38 = vpop.eup %2555 }
 0x293   :  { %2036 = vst [vmem:[#allocation2 + $0xe0] sm:$0xff] %v1873_v32  ;;  %v1876_v23 = vmul.f32 %v2556_v38, %v3761_v2 }
 0x295   :  { %v2558_v57 = vpop.eup %2557  ;;  %v2007_v11 = vsel %vm1975_vm3, %v1876_v23, 0.0 }
 0x296   :  { %2039 = vst [vmem:[#allocation2 + $0xf8] sm:$0xff] %v2007_v11  ;;  %v1875_v39 = vmul.f32 %v2558_v57, %v3768_v27 }
 0x297   :  { %v2560_v10 = vpop.eup %2559 }
 0x298   :  { %2038 = vst [vmem:[#allocation2 + $0xf0] sm:$0xff] %v1875_v39  ;;  %v1874_v55 = vmul.f32 %v2560_v10, %v3773_v45 }
 0x29a   :  { %2037 = vst [vmem:[#allocation2 + $0xe8] sm:$0xff] %v1874_v55 }
 0x29b   :  { %2572 = shalt.err (!%p2569_p4)
}
 0x29c   :  { %s2585_s26 = smov 128   ;;  %s2586_s3 = smov 8  }
 0x29d   :  { %2051 = dma.vmem_to_hbm [thread:$0]  %s2046_s24, 4096, %s3820_s7, [#allocation3], %s2585_s26, %s2585_s26, %s2586_s3  }
 0x29e   :  { %2581 = dma.done.wait [#allocation3], 4096  }
 0x29f   :  { %2582 = vsyncadd [#allocation3], 4294963200 }
 0x2a0   :  { %2055 = vsyncpa [#allocation3], 1 }

</bundles_post_ra>
